<compile_context>
chip_gen: v7x
topology: tpu7x:2x2x1
jax: 0.10.0
libtpu: 0.0.40
codegen_flags: <defaults>
</compile_context>

<pallas_src>
import jax
import jax.numpy as jnp
from jax.experimental import pallas as pl
from jax.experimental.pallas import tpu as pltpu

_D_IN = 28 * 28
_HID = 64
_OUT = 10
_LANE = 128


def _mlp_kernel(x_ref, w1_ref, b1_ref, w2_ref, b2_ref,
                w3_ref, b3_ref, w4_ref, b4_ref, o_ref):
    # Layer 1: (tb,784) @ (784,64) + (1,64) -> ReLU.  bf16 MXU path when the
    # caller streams bf16 activations; f32 accumulation either way.
    h = jnp.dot(x_ref[...], w1_ref[...], preferred_element_type=jnp.float32)
    h = jnp.maximum(h + b1_ref[...], 0.0)
    # Layers 2/3: hidden stays f32 (never hits HBM; no downcast filler ops).
    h = jnp.maximum(
        jnp.dot(h, w2_ref[...], preferred_element_type=jnp.float32) + b2_ref[...], 0.0)
    h = jnp.maximum(
        jnp.dot(h, w3_ref[...], preferred_element_type=jnp.float32) + b3_ref[...], 0.0)
    # Layer 4: (tb,64) @ (64,10) + (1,10)   (no ReLU)
    logits = jnp.dot(h, w4_ref[...], preferred_element_type=jnp.float32) + b4_ref[...]

    # log_softmax over dim=1 (classes), numerically stable, f32.
    # max/sum -> XLU, exp/log -> EUP: both idle slots while HBM/MXU bound.
    m = jnp.max(logits, axis=-1, keepdims=True)
    shifted = logits - m
    lse = jnp.log(jnp.sum(jnp.exp(shifted), axis=-1, keepdims=True))
    o_ref[...] = (shifted - lse).astype(o_ref.dtype)


def _round_up(n, m):
    return ((n + m - 1) // m) * m


def _padded_tile_bytes(rows, cols, dtype):
    """VMEM footprint of one buffer of a (rows, cols) tile after (sublane,lane)
    padding: lane pads to 128, sublane pads to 8 (f32) / 16 (bf16)."""
    dt = jnp.dtype(dtype)
    sub = 8 * max(1, 4 // dt.itemsize)
    return _round_up(max(rows, 1), sub) * _round_up(cols, _LANE) * dt.itemsize


def net_forward(x, params, *, tile_b=2048, x_buffers=2):
    """x: (B, 784), f32 or bf16 (streamed as-is, no wrapper-side copy/cast).
    params: weights (in, out) and biases (1, out), f32.
    x_buffers: pipeline depth for the streamed x tile (sweep 3 on v7x)."""
    B = x.shape[0]
    xdt = jnp.dtype(x.dtype)

    # Sublane alignment for the batch-tile block: bf16 packs 16 rows / vreg.
    align = 16 if xdt.itemsize < 4 else 8
    # Gate the tile so the grid has >= 2 steps: keeps both v7x TensorCores fed
    # (dimension_semantics "parallel"); costs one extra ~0.35 us step elsewhere.
    half = _round_up(-(-B // 2), align)
    tb = _round_up(min(tile_b, half), align)

    # Only w1 needs x's dtype (it multiplies the streamed activations); the
    # 64-wide weights and all biases stay f32, as do the hidden activations.
    w1 = params["w1"].astype(xdt)
    ws = [w1, params["w2"], params["w3"], params["w4"]]
    bs = [params[f"b{i}"].astype(jnp.float32) for i in range(1, 5)]
    args = (x, ws[0], bs[0], ws[1], bs[1], ws[2], bs[2], ws[3], bs[3])

    # VMEM accounting (lane/sublane-padded), incl. double-buffered params, the
    # output tile, and 8 MiB headroom for Mosaic internal scratch.  Shrink the
    # tile if it would blow a 40 MiB budget (v7x: 64 MiB/TC physical).
    param_buf_bytes = 2 * sum(
        _padded_tile_bytes(a.shape[0], a.shape[1], a.dtype) for a in args[1:])

    def vmem_need(tb_):
        x_buf = max(x_buffers, 2) * _padded_tile_bytes(tb_, _D_IN, xdt)
        o_buf = 2 * _padded_tile_bytes(tb_, _OUT, jnp.float32)
        return x_buf + o_buf + param_buf_bytes + (8 << 20)

    while tb > align and vmem_need(tb) > (40 << 20):
        tb = _round_up(tb // 2, align)
    need = vmem_need(tb)
    # Only raise the scoped limit when the conservative per-generation default
    # (v5e: 16 MiB) would not cover the double-buffered working set.
    vmem_limit = need if need > (16 << 20) else None

    grid = (pl.cdiv(B, tb),)

    # x streams through the pipeline (ragged last block handled by Pallas);
    # weights/biases use constant index_maps -> VMEM-resident across steps.
    if x_buffers != 2:
        x_spec = pl.BlockSpec((tb, _D_IN), lambda i: (i, 0),
                              pipeline_mode=pl.Buffered(x_buffers))
    else:
        x_spec = pl.BlockSpec((tb, _D_IN), lambda i: (i, 0))
    _const = lambda i: (0, 0)
    in_specs = [x_spec]
    for w, b in zip(ws, bs):
        in_specs.append(pl.BlockSpec(w.shape, _const))
        in_specs.append(pl.BlockSpec(b.shape, _const))
    out_spec = pl.BlockSpec((tb, _OUT), lambda i: (i, 0))

    # Advisory cost estimate so XLA schedules/overlaps this call sensibly.
    flops = 2 * B * (_D_IN * _HID + _HID * _HID + _HID * _HID + _HID * _OUT)
    param_bytes = sum(int(a.size) * a.dtype.itemsize for a in args[1:])
    cost = pl.CostEstimate(
        flops=flops,
        transcendentals=B * (_OUT + 1),                 # exp per class + log
        bytes_accessed=int(x.size) * xdt.itemsize       # streamed input
        + B * _OUT * 4                                  # output
        + param_bytes,                                  # resident params
    )

    return pl.pallas_call(
        _mlp_kernel,
        out_shape=jax.ShapeDtypeStruct((B, _OUT), jnp.float32),
        grid=grid,
        in_specs=in_specs,
        out_specs=out_spec,
        compiler_params=pltpu.CompilerParams(
            dimension_semantics=("parallel",),  # 2x on v7x (2 TCs); no-op v5e/v6e
            vmem_limit_bytes=vmem_limit,
        ),
        cost_estimate=cost,
    )(*args)


def init_params(key):
    """Deterministic init matching nn.Linear shapes (stored as (in, out))."""
    dims = [(_D_IN, _HID), (_HID, _HID), (_HID, _HID), (_HID, _OUT)]
    params = {}
    keys = jax.random.split(key, 2 * len(dims))
    for i, (d_in, d_out) in enumerate(dims):
        bound = 1.0 / jnp.sqrt(jnp.float32(d_in))  # PyTorch-style uniform bound
        params[f"w{i + 1}"] = jax.random.uniform(
            keys[2 * i], (d_in, d_out), minval=-bound, maxval=bound, dtype=jnp.float32)
        params[f"b{i + 1}"] = jax.random.uniform(
            keys[2 * i + 1], (1, d_out), minval=-bound, maxval=bound, dtype=jnp.float32)
    return params


def _reference(x, p):
    h = jax.nn.relu(x @ p["w1"] + p["b1"])
    h = jax.nn.relu(h @ p["w2"] + p["b2"])
    h = jax.nn.relu(h @ p["w3"] + p["b3"])
    logits = h @ p["w4"] + p["b4"]
    return jax.nn.log_softmax(logits, axis=1)


if __name__ == "__main__":
    key = jax.random.PRNGKey(0)
    pkey, xkey = jax.random.split(key)
    params = init_params(pkey)

    B = 200  # not a tile multiple -> exercises the ragged-last-block path
    x = jax.random.normal(xkey, (B, _D_IN), dtype=jnp.float32)
    ref = _reference(x, params)

    # f32, small tile -> multi-step grid with a partial last block (no pad).
    out_a = jax.block_until_ready(net_forward(x, params, tile_b=64))
    assert out_a.shape == (B, _OUT)
    assert jnp.allclose(out_a, ref, atol=1e-5, rtol=1e-5)
    assert jnp.allclose(jnp.sum(jnp.exp(out_a), axis=1), 1.0, atol=1e-5)

    # f32, default tile -> v7x gating still yields a 2-step grid; ragged tail.
    out_b = jax.block_until_ready(net_forward(x, params))
    assert out_b.shape == (B, _OUT)
    assert jnp.allclose(out_b, ref, atol=1e-5, rtol=1e-5)

    # bf16 path: the *caller* already holds bf16 activations (no wrapper cast
    # of an f32 x); layer-1 matmul runs bf16 on the MXU, rest stays f32.
    out_c = jax.block_until_ready(net_forward(x.astype(jnp.bfloat16), params))
    assert out_c.shape == (B, _OUT)
    assert jnp.allclose(out_c, ref, atol=5e-2, rtol=5e-2)
    assert jnp.allclose(jnp.sum(jnp.exp(out_c), axis=1), 1.0, atol=5e-3)

    print("KERNEL_OK")
</pallas_src>

<mosaic_0001>
module attributes {stable_mosaic.version = 11 : i64} {
  func.func @_mlp_kernel(%arg0: i32, %arg1: memref<64x784xf32, #tpu.memory_space<vmem>>, %arg2: memref<784x64xf32, #tpu.memory_space<vmem>>, %arg3: memref<1x64xf32, #tpu.memory_space<vmem>>, %arg4: memref<64x64xf32, #tpu.memory_space<vmem>>, %arg5: memref<1x64xf32, #tpu.memory_space<vmem>>, %arg6: memref<64x64xf32, #tpu.memory_space<vmem>>, %arg7: memref<1x64xf32, #tpu.memory_space<vmem>>, %arg8: memref<64x10xf32, #tpu.memory_space<vmem>>, %arg9: memref<1x10xf32, #tpu.memory_space<vmem>>, %arg10: memref<64x10xf32, #tpu.memory_space<vmem>>) attributes {dimension_semantics = [#tpu.dimension_semantics<parallel>], iteration_bounds = array<i64: 4>, scalar_prefetch = 0 : i64, scratch_operands = 0 : i64, tpu.core_type = #tpu.core_type<tc>, window_params = [{transform_indices = @transform_0, window_bounds = array<i64: 64, 784>}, {pipeline_mode = #tpu.pipeline_mode<synchronous>, transform_indices = @transform_1, window_bounds = array<i64: 784, 64>}, {pipeline_mode = #tpu.pipeline_mode<synchronous>, transform_indices = @transform_2, window_bounds = array<i64: 1, 64>}, {pipeline_mode = #tpu.pipeline_mode<synchronous>, transform_indices = @transform_3, window_bounds = array<i64: 64, 64>}, {pipeline_mode = #tpu.pipeline_mode<synchronous>, transform_indices = @transform_4, window_bounds = array<i64: 1, 64>}, {pipeline_mode = #tpu.pipeline_mode<synchronous>, transform_indices = @transform_5, window_bounds = array<i64: 64, 64>}, {pipeline_mode = #tpu.pipeline_mode<synchronous>, transform_indices = @transform_6, window_bounds = array<i64: 1, 64>}, {pipeline_mode = #tpu.pipeline_mode<synchronous>, transform_indices = @transform_7, window_bounds = array<i64: 64, 10>}, {pipeline_mode = #tpu.pipeline_mode<synchronous>, transform_indices = @transform_8, window_bounds = array<i64: 1, 10>}, {transform_indices = @transform_9, window_bounds = array<i64: 64, 10>}]} {
    %c0 = arith.constant 0 : index
    %c0_0 = arith.constant 0 : index
    %0 = vector.load %arg1[%c0, %c0_0] : memref<64x784xf32, #tpu.memory_space<vmem>>, vector<64x784xf32>
    %c0_1 = arith.constant 0 : index
    %c0_2 = arith.constant 0 : index
    %1 = vector.load %arg2[%c0_1, %c0_2] : memref<784x64xf32, #tpu.memory_space<vmem>>, vector<784x64xf32>
    %cst = arith.constant dense<0.000000e+00> : vector<64x64xf32>
    %2 = tpu.matmul %0, %1, %cst {dimension_numbers = #tpu.dot_dimension_numbers<[1], [0], [0], [1], [0, 0, 1, 1], [], []>} : vector<64x784xf32>, vector<784x64xf32>, vector<64x64xf32> -> vector<64x64xf32>
    %c0_3 = arith.constant 0 : index
    %c0_4 = arith.constant 0 : index
    %3 = vector.load %arg3[%c0_3, %c0_4] : memref<1x64xf32, #tpu.memory_space<vmem>>, vector<1x64xf32>
    %4 = vector.broadcast %3 : vector<1x64xf32> to vector<64x64xf32>
    %5 = arith.addf %2, %4 : vector<64x64xf32>
    %cst_5 = arith.constant 0.000000e+00 : f32
    %6 = vector.broadcast %cst_5 : f32 to vector<64x64xf32>
    %7 = arith.maximumf %5, %6 : vector<64x64xf32>
    %c0_6 = arith.constant 0 : index
    %c0_7 = arith.constant 0 : index
    %8 = vector.load %arg4[%c0_6, %c0_7] : memref<64x64xf32, #tpu.memory_space<vmem>>, vector<64x64xf32>
    %cst_8 = arith.constant dense<0.000000e+00> : vector<64x64xf32>
    %9 = tpu.matmul %7, %8, %cst_8 {dimension_numbers = #tpu.dot_dimension_numbers<[1], [0], [0], [1], [0, 0, 1, 1], [], []>} : vector<64x64xf32>, vector<64x64xf32>, vector<64x64xf32> -> vector<64x64xf32>
    %c0_9 = arith.constant 0 : index
    %c0_10 = arith.constant 0 : index
    %10 = vector.load %arg5[%c0_9, %c0_10] : memref<1x64xf32, #tpu.memory_space<vmem>>, vector<1x64xf32>
    %11 = vector.broadcast %10 : vector<1x64xf32> to vector<64x64xf32>
    %12 = arith.addf %9, %11 : vector<64x64xf32>
    %cst_11 = arith.constant 0.000000e+00 : f32
    %13 = vector.broadcast %cst_11 : f32 to vector<64x64xf32>
    %14 = arith.maximumf %12, %13 : vector<64x64xf32>
    %c0_12 = arith.constant 0 : index
    %c0_13 = arith.constant 0 : index
    %15 = vector.load %arg6[%c0_12, %c0_13] : memref<64x64xf32, #tpu.memory_space<vmem>>, vector<64x64xf32>
    %cst_14 = arith.constant dense<0.000000e+00> : vector<64x64xf32>
    %16 = tpu.matmul %14, %15, %cst_14 {dimension_numbers = #tpu.dot_dimension_numbers<[1], [0], [0], [1], [0, 0, 1, 1], [], []>} : vector<64x64xf32>, vector<64x64xf32>, vector<64x64xf32> -> vector<64x64xf32>
    %c0_15 = arith.constant 0 : index
    %c0_16 = arith.constant 0 : index
    %17 = vector.load %arg7[%c0_15, %c0_16] : memref<1x64xf32, #tpu.memory_space<vmem>>, vector<1x64xf32>
    %18 = vector.broadcast %17 : vector<1x64xf32> to vector<64x64xf32>
    %19 = arith.addf %16, %18 : vector<64x64xf32>
    %cst_17 = arith.constant 0.000000e+00 : f32
    %20 = vector.broadcast %cst_17 : f32 to vector<64x64xf32>
    %21 = arith.maximumf %19, %20 : vector<64x64xf32>
    %c0_18 = arith.constant 0 : index
    %c0_19 = arith.constant 0 : index
    %22 = vector.load %arg8[%c0_18, %c0_19] : memref<64x10xf32, #tpu.memory_space<vmem>>, vector<64x10xf32>
    %cst_20 = arith.constant dense<0.000000e+00> : vector<64x10xf32>
    %23 = tpu.matmul %21, %22, %cst_20 {dimension_numbers = #tpu.dot_dimension_numbers<[1], [0], [0], [1], [0, 0, 1, 1], [], []>} : vector<64x64xf32>, vector<64x10xf32>, vector<64x10xf32> -> vector<64x10xf32>
    %c0_21 = arith.constant 0 : index
    %c0_22 = arith.constant 0 : index
    %24 = vector.load %arg9[%c0_21, %c0_22] : memref<1x10xf32, #tpu.memory_space<vmem>>, vector<1x10xf32>
    %25 = vector.broadcast %24 : vector<1x10xf32> to vector<64x10xf32>
    %26 = arith.addf %23, %25 : vector<64x10xf32>
    %cst_23 = arith.constant dense<0xFF800000> : vector<64xf32>
    %27 = vector.multi_reduction <maximumf>, %26, %cst_23 [1] : vector<64x10xf32> to vector<64xf32>
    %28 = vector.shape_cast %27 : vector<64xf32> to vector<64x1xf32>
    %29 = vector.broadcast %28 : vector<64x1xf32> to vector<64x10xf32>
    %30 = arith.subf %26, %29 : vector<64x10xf32>
    %31 = math.exp %30 : vector<64x10xf32>
    %cst_24 = arith.constant dense<0.000000e+00> : vector<64xf32>
    %32 = vector.multi_reduction <add>, %31, %cst_24 [1] : vector<64x10xf32> to vector<64xf32>
    %33 = vector.shape_cast %32 : vector<64xf32> to vector<64x1xf32>
    %34 = math.log %33 : vector<64x1xf32>
    %35 = vector.broadcast %34 : vector<64x1xf32> to vector<64x10xf32>
    %36 = arith.subf %30, %35 : vector<64x10xf32>
    %c0_25 = arith.constant 0 : index
    %c0_26 = arith.constant 0 : index
    %37 = vector.load %arg10[%c0_25, %c0_26] : memref<64x10xf32, #tpu.memory_space<vmem>>, vector<64x10xf32>
    tpu.vector_store %arg10[%c0_25, %c0_26], %36 {strides = array<i32>} : memref<64x10xf32, #tpu.memory_space<vmem>>, vector<64x10xf32>,
    return
  }
  func.func @transform_0(%arg0: i32) -> (i32, i32) {
    %c0_i32 = arith.constant 0 : i32
    %c0_i32_0 = arith.constant 0 : i32
    return %arg0, %c0_i32 : i32, i32
  }
  func.func @transform_1(%arg0: i32) -> (i32, i32) {
    %c0_i32 = arith.constant 0 : i32
    %c0_i32_0 = arith.constant 0 : i32
    %c0_i32_1 = arith.constant 0 : i32
    return %c0_i32, %c0_i32_0 : i32, i32
  }
  func.func @transform_2(%arg0: i32) -> (i32, i32) {
    %c0_i32 = arith.constant 0 : i32
    %c0_i32_0 = arith.constant 0 : i32
    %c0_i32_1 = arith.constant 0 : i32
    return %c0_i32, %c0_i32_0 : i32, i32
  }
  func.func @transform_3(%arg0: i32) -> (i32, i32) {
    %c0_i32 = arith.constant 0 : i32
    %c0_i32_0 = arith.constant 0 : i32
    %c0_i32_1 = arith.constant 0 : i32
    return %c0_i32, %c0_i32_0 : i32, i32
  }
  func.func @transform_4(%arg0: i32) -> (i32, i32) {
    %c0_i32 = arith.constant 0 : i32
    %c0_i32_0 = arith.constant 0 : i32
    %c0_i32_1 = arith.constant 0 : i32
    return %c0_i32, %c0_i32_0 : i32, i32
  }
  func.func @transform_5(%arg0: i32) -> (i32, i32) {
    %c0_i32 = arith.constant 0 : i32
    %c0_i32_0 = arith.constant 0 : i32
    %c0_i32_1 = arith.constant 0 : i32
    return %c0_i32, %c0_i32_0 : i32, i32
  }
  func.func @transform_6(%arg0: i32) -> (i32, i32) {
    %c0_i32 = arith.constant 0 : i32
    %c0_i32_0 = arith.constant 0 : i32
    %c0_i32_1 = arith.constant 0 : i32
    return %c0_i32, %c0_i32_0 : i32, i32
  }
  func.func @transform_7(%arg0: i32) -> (i32, i32) {
    %c0_i32 = arith.constant 0 : i32
    %c0_i32_0 = arith.constant 0 : i32
    %c0_i32_1 = arith.constant 0 : i32
    return %c0_i32, %c0_i32_0 : i32, i32
  }
  func.func @transform_8(%arg0: i32) -> (i32, i32) {
    %c0_i32 = arith.constant 0 : i32
    %c0_i32_0 = arith.constant 0 : i32
    %c0_i32_1 = arith.constant 0 : i32
    return %c0_i32, %c0_i32_0 : i32, i32
  }
  func.func @transform_9(%arg0: i32) -> (i32, i32) {
    %c0_i32 = arith.constant 0 : i32
    %c0_i32_0 = arith.constant 0 : i32
    return %arg0, %c0_i32 : i32, i32
  }
}

</mosaic_0001>

<bundles_post_ra>
// kernel: tpu_custom_call.1
= control target key start
LH: loop header
LB: loop body
LE: loop exit
PB: predicated region body
PF: predicated region fallthrough
CT: control target
= control target key end

     0   :  { %14 = vsyncpa [#allocation3], 0  ;;  %s3342_s0 = inlined_call_operand.hbm [shape: f32[200,784], index: 0, kind: input, shape index: {}]   ;;  %s3343_s1 = inlined_call_operand.vmem [shape: f32[784,64], index: 1, kind: input, shape index: {}]   ;;  %s3344_s2 = inlined_call_operand.vmem [shape: f32[1,64], index: 2, kind: input, shape index: {}]   ;;  %s3345_s3 = inlined_call_operand.vmem [shape: f32[64,64], index: 3, kind: input, shape index: {}]   ;;  %s3346_s4 = inlined_call_operand.vmem [shape: f32[1,64], index: 4, kind: input, shape index: {}]   ;;  %s3347_s5 = inlined_call_operand.vmem [shape: f32[64,64], index: 5, kind: input, shape index: {}]   ;;  %s3348_s6 = inlined_call_operand.vmem [shape: f32[1,64], index: 6, kind: input, shape index: {}]   ;;  %s3349_s7 = inlined_call_operand.vmem [shape: f32[64,10], index: 7, kind: input, shape index: {}]   ;;  %s3350_s8 = inlined_call_operand.vmem [shape: f32[1,10], index: 8, kind: input, shape index: {}]   ;;  %s3351_s9 = inlined_call_operand.vmem [shape: f32[200,10], index: 9, kind: output, shape index: {}]  }
   0x1   :  { %16 = vsyncpa [#allocation3 + $0x1], 0  ;;  %s2645_s30 = smov 0   ;;  %s2647_s10 = smov 0  }
   0x2   :  { %s2649_s11 = smov 0   ;;  %s2651_s12 = smov 0  }
   0x3 LB: > { %s2664_s13 = sadd.s32 4294967295, %s2558_s12   ;;  %s2667_s14 = sadd.s32 1, %s2558_s12   ;;  %s2558_s12 = sphi %s2651_s12, %s3360_s12   ;;  %s2554_s11 = sphi %s2649_s11, %s3359_s11   ;;  %s2550_s10 = sphi %s2647_s10, %s3358_s10   ;;  %s2546_s30 = sphi %s2645_s30, %s3357_s30  }
   0x4   : > { %s26_s15 = ssub.s32 %s2558_s12, %s2667_s14  ;;  %s29_s16 = sadd.s32 1, %s2554_s11 }
   0x5   : > { %p27_p0 = scmp.eq.s32.totalorder %s26_s15, 0  ;;  %p36_p1 = scmp.ne.s32.totalorder %s2554_s11, %s2550_s10 }
   0x6   : > { %p37_p2 = scmp.eq.s32.totalorder %s2558_s12, 0  ;;  %p42_p3 = scmp.ne.s32.totalorder %s2550_s10, %s2546_s30 }
   0x7   : > { %s2677_s17 = scalar_select %p27_p0, %s2554_s11, %s29_s16  }
   0x8   : > { %p38_p4 = por %p37_p2, %p36_p1  ;;  %p43_p5 = scmp.eq.s32.totalorder %s2664_s13, 0 }
   0x9   : > { %p234_p6 = scmp.eq.s32.totalorder %s2664_s13, 3  ;;  %p1790_p9 = scmp.ge.s32.totalorder %s2558_s12, 4 }
   0xa   : > { %p2681_p7 = por %p43_p5, %p42_p3 }
   0xb   : > { %p2685_p8 = por %p234_p6, %p36_p1  ;;  %280 = sbr.rel (%p1790_p9) target bundleno = 54 (0x36), region = 48 }
  0x12   : > { %283 = sbr.rel (!%p38_p4) target bundleno = 54 (0x36), region = 52  ;;  %s284_s20 = sand.u32 (%p38_p4), 1, %s2554_s11  }
  0x13   : > { %s1791_s21 = sshll.u32 (%p38_p4), %s2558_s12, 3  ;;  %s2330_s22 = smul.u32 (%p38_p4), 448, %s284_s20 }
  0x14   : > { %s290_s23 = ssub.s32 (%p38_p4), 25, %s1791_s21  ;;  %s2695_s26 = scalar_lea.sflag (%p38_p4), [#allocation3], %s284_s20 }
  0x15   : > { %p291_p10 = scmp.lt.s32.totalorder (%p38_p4), %s290_s23, 8  ;;  %s288_s27 = scalar_lea.vmem (%p38_p4), [#allocation2], %s2330_s22 }
  0x19   : > { %s3362_s23 = smov (!%p291_p10, %s290_s23), 8 }
  0x1a   : > { %s2692_s24 = smul.u32 896, %s3362_s23 }
  0x1c   : > { %s296_s25 = ssub.s32 7168, %s2692_s24 }
  0x1d   : > { %297 = vsyncadd %s2695_s26, %s296_s25  ;;  %p1794_p11 = scmp.ne.s32.totalorder %s2692_s24, 0  ;;  %s2331_s28 = smul.u32 7168, %s2558_s12 }
  0x1e   : > { %s303_s29 = sshll.u32 %s288_s27, 4  ;;  %s2468_s23 = scalar_lea.hbm %s3342_s0, 22400  ;;  %s2705_s29 = int_to_ptr.vmem [resolvable:$true] %s303_s29 }
  0x1f   : > { %s2703_s16 = scalar_lea.hbm %s3342_s0, %s2331_s28 }
  0x20   : > { %s2464_s20 = scalar_lea.hbm %s2703_s16, %s2692_s24  ;;  %p2469_p1 = scmp.lt.u32.totalorder %s2703_s16, %s3342_s0 }
  0x21   : > { %p2465_p12 = scmp.ne.s32.totalorder %s2703_s16, %s2464_s20  ;;  %p2470_p2 = scmp.lt.u32.totalorder %s2468_s23, %s2464_s20 }
  0x22   : > { %p2472_p4 = scmp.lt.u32.totalorder %s2464_s20, %s2703_s16 }
  0x23   : > { %p2466_p13 = pnand %p2465_p12, %p1794_p11  ;;  %p2471_p3 = por %p2470_p2, %p2469_p1 }
  0x25   : > { %p2467_p0 = pneg %p2466_p13  ;;  %p2473_p5 = por %p2472_p4, %p2471_p3 }
  0x27   : > { %p2474_p6 = pnand %p2473_p5, %p2467_p0 }
  0x29   : > { %2477 = shalt.err (!%p2474_p6)
}
  0x2a   : > { %s2478_s28 = scalar_lea.vmem %s2705_s29, %s2692_s24  ;;  %s2592_s30 = smov [#allocation2]  }
  0x2b   : > { %p2479_p9 = scmp.ne.s32.totalorder %s2705_s29, %s2478_s28  ;;  %s2482_s15 = sshll.u32 %s2592_s30, 4  ;;  %s2483_s15 = int_to_ptr.vmem [resolvable:$false] %s2482_s15 }
  0x2c   : > { %s2484_s21 = scalar_lea.vmem %s2483_s15, 14336  ;;  %p2485_p13 = scmp.lt.s32.totalorder %s2705_s29, %s2483_s15 }
  0x2d   : > { %p2480_p10 = pnand %p2479_p9, %p1794_p11  ;;  %p2486_p1 = scmp.lt.s32.totalorder %s2484_s21, %s2478_s28 }
  0x2f   : > { %p2481_p12 = pneg %p2480_p10  ;;  %p2487_p2 = por %p2486_p1, %p2485_p13 }
  0x31   : > { %p2488_p3 = pnand %p2487_p2, %p2481_p12 }
  0x33   : > { %2491 = shalt.err (!%p2488_p3)
}
  0x34   : > { %s2593_s20 = smov 896   ;;  %s2594_s22 = smov 56  }
  0x35   : > { %309 = dma.hbm_to_vmem [thread:$0]  (%p1794_p11), %s2703_s16, %s2692_s24, %s2705_s29, %s2695_s26, %s2593_s20, %s2593_s20, %s2594_s22  }
  0x36 PF: > { %p1798_p0 = scmp.ge.s32.totalorder %s2558_s12, 1  ;;  %p311_p4 = scmp.lt.s32.totalorder %s2558_s12, 5 }
  0x38   : > { %p312_p5 = pnand %p1798_p0, %p311_p4 }
  0x39   : > { %s2735_s23 = sand.u32 (!%p312_p5), 1, %s2550_s10  }
  0x3a   : > { %315 = sbr.rel (%p312_p5) target bundleno = 1399 (0x577), region = 56  ;;  %s318_s27 = scalar_lea.sflag (!%p312_p5), [#allocation3], %s2735_s23 }
  0x3b   : > { %s2332_s25 = smul.u32 (!%p312_p5), 448, %s2735_s23 }
  0x3d   : > { %s2739_s28 = scalar_lea.vmem (!%p312_p5), [#allocation2], %s2332_s25 }
  0x41   : > { %2541 = dma.done.wait (%p2681_p7), %s318_s27, 7168  }
  0x42   : > { %2543 = vsyncadd (%p2681_p7), %s318_s27, 4294960128  ;;  %v438_v0 = vld [vmem:[%s3343_s1 + $0x80] sm:$0xff]  ;;  %v439_v1 = vld [vmem:[%s3343_s1 + $0x88] sm:$0xff]  ;;  %vm527_vm0 = vcmask 130048   ;;  %vm995_vm1 = vcmask 523264   ;;  %vm1429_vm2 = vcmask 80896  }
  0x43   : > { %v422_v2 = vld [vmem:[%s3343_s1] sm:$0xff]  ;;  %v2182_v3 = vpack.c.bf16 %v439_v1, %v438_v0  ;;  %v423_v4 = vld [vmem:[%s3343_s1 + $0x8] sm:$0xff]  ;;  %v440_v11 = vld [vmem:[%s3343_s1 + $0x90] sm:$0xff]  ;;  %s1799_s26 = sshll.u32 %s2735_s23, 6  ;;  %s1837_s23 = sshll.u32 (%p2685_p8), %s2664_s13, 3 }
  0x44   : > { %v470_v5 = vld [vmem:[%s3343_s1 + $0x180] sm:$0xff]  ;;  %v471_v6 = vld [vmem:[%s3343_s1 + $0x188] sm:$0xff]  ;;  %v2184_v7 = vpack.c.bf16 %v423_v4, %v422_v2  ;;  %v441_v13 = vld [vmem:[%s3343_s1 + $0x98] sm:$0xff]  ;;  %s3253_s12 = scalar_lea.vmem [#allocation4], %s1799_s26   ;;  %s1853_s29 = sshll.u32 (%p2685_p8), %s2664_s13, 6 }
  0x45   : > { %v2214_v8 = vpack.c.bf16 %v471_v6, %v470_v5  ;;  %v454_v9 = vld [vmem:[%s3343_s1 + $0x100] sm:$0xff]  ;;  %v455_v10 = vld [vmem:[%s3343_s1 + $0x108] sm:$0xff]  ;;  %2183 = vmatprep.subr.bf16.mxu0 %v2182_v3  ;;  %v424_v14 = vld [vmem:[%s3343_s1 + $0x10] sm:$0xff]  ;;  %v2186_v16 = vpack.c.bf16 %v441_v13, %v440_v11  ;;  %s1542_s16 = ssub.s32 (%p2685_p8), 25, %s1837_s23  ;;  %s3285_s21 = scalar_lea.vmem (%p2685_p8), %s3351_s9, %s1853_s29  }
  0x46   : > { %v2216_v12 = vpack.c.bf16 %v455_v10, %v454_v9  ;;  %v425_v15 = vld [vmem:[%s3343_s1 + $0x18] sm:$0xff]  ;;  %2185 = vmatpush3.bf16.msra.mxu0 %v2184_v7  ;;  %v472_v18 = vld [vmem:[%s3343_s1 + $0x190] sm:$0xff]  ;;  %v442_v23 = vld [vmem:[%s3343_s1 + $0xa0] sm:$0xff]  ;;  %p1543_p7 = scmp.lt.s32.totalorder (%p2685_p8), %s1542_s16, 8 }
  0x47   : > { %2215 = vmatprep.subr.bf16.mxu1 %v2214_v8  ;;  %v2188_v17 = vpack.c.bf16 %v425_v15, %v424_v14  ;;  %v473_v19 = vld [vmem:[%s3343_s1 + $0x198] sm:$0xff]  ;;  %v456_v20 = vld [vmem:[%s3343_s1 + $0x110] sm:$0xff]  ;;  %v443_v24 = vld [vmem:[%s3343_s1 + $0xa8] sm:$0xff]  ;;  %2187 = vmatprep.subr.bf16.mxu0 %v2186_v16 }
  0x48   : > { %2217 = vmatpush3.bf16.msra.mxu1 %v2216_v12  ;;  %v2218_v21 = vpack.c.bf16 %v473_v19, %v472_v18  ;;  %v457_v22 = vld [vmem:[%s3343_s1 + $0x118] sm:$0xff]  ;;  %v2190_v26 = vpack.c.bf16 %v443_v24, %v442_v23  ;;  %v426_v27 = vld [vmem:[%s3343_s1 + $0x20] sm:$0xff]  ;;  %v427_v28 = vld [vmem:[%s3343_s1 + $0x28] sm:$0xff] }
  0x49   : > { %v2220_v25 = vpack.c.bf16 %v457_v22, %v456_v20  ;;  %v474_v29 = vld [vmem:[%s3343_s1 + $0x1a0] sm:$0xff]  ;;  %v475_v30 = vld [vmem:[%s3343_s1 + $0x1a8] sm:$0xff]  ;;  %v2192_v33 = vpack.c.bf16 %v427_v28, %v426_v27  ;;  %v444_v35 = vld [vmem:[%s3343_s1 + $0xb0] sm:$0xff] }
  0x4a   : > { %2219 = vmatprep.subr.bf16.mxu1 %v2218_v21  ;;  %v458_v31 = vld [vmem:[%s3343_s1 + $0x120] sm:$0xff]  ;;  %v459_v32 = vld [vmem:[%s3343_s1 + $0x128] sm:$0xff]  ;;  %2189 = vmatpush3.bf16.msra.mxu0 %v2188_v17  ;;  %v2222_v34 = vpack.c.bf16 %v475_v30, %v474_v29  ;;  %v445_v36 = vld [vmem:[%s3343_s1 + $0xb8] sm:$0xff] }
  0x4b   : > { %v428_v37 = vld [vmem:[%s3343_s1 + $0x30] sm:$0xff]  ;;  %2191 = vmatprep.subr.bf16.mxu0 %v2190_v26  ;;  %v2224_v38 = vpack.c.bf16 %v459_v32, %v458_v31  ;;  %v2194_v39 = vpack.c.bf16 %v445_v36, %v444_v35  ;;  %v429_v40 = vld [vmem:[%s3343_s1 + $0x38] sm:$0xff]  ;;  %v446_v46 = vld [vmem:[%s3343_s1 + $0xc0] sm:$0xff] }
  0x4c   : > { %2221 = vmatpush3.bf16.msra.mxu1 %v2220_v25  ;;  %v476_v41 = vld [vmem:[%s3343_s1 + $0x1b0] sm:$0xff]  ;;  %v477_v42 = vld [vmem:[%s3343_s1 + $0x1b8] sm:$0xff]  ;;  %v447_v47 = vld [vmem:[%s3343_s1 + $0xc8] sm:$0xff]  ;;  %v2196_v48 = vpack.c.bf16 %v429_v40, %v428_v37 }
  0x4d   : > { %2223 = vmatprep.subr.bf16.mxu1 %v2222_v34  ;;  %v2226_v43 = vpack.c.bf16 %v477_v42, %v476_v41  ;;  %v460_v44 = vld [vmem:[%s3343_s1 + $0x130] sm:$0xff]  ;;  %v461_v45 = vld [vmem:[%s3343_s1 + $0x138] sm:$0xff]  ;;  %v478_v49 = vld [vmem:[%s3343_s1 + $0x1c0] sm:$0xff]  ;;  %v2198_v52 = vpack.c.bf16 %v447_v47, %v446_v46 }
  0x4e   : > { %2193 = vmatpush3.bf16.msra.mxu0 %v2192_v33  ;;  %v479_v50 = vld [vmem:[%s3343_s1 + $0x1c8] sm:$0xff]  ;;  %v2228_v51 = vpack.c.bf16 %v461_v45, %v460_v44  ;;  %v430_v53 = vld [vmem:[%s3343_s1 + $0x40] sm:$0xff]  ;;  %v448_v58 = vld [vmem:[%s3343_s1 + $0xd0] sm:$0xff] }
  0x4f   : > { %2195 = vmatprep.subr.bf16.mxu0 %v2194_v39  ;;  %v431_v54 = vld [vmem:[%s3343_s1 + $0x48] sm:$0xff]  ;;  %v462_v55 = vld [vmem:[%s3343_s1 + $0x140] sm:$0xff]  ;;  %v2230_v56 = vpack.c.bf16 %v479_v50, %v478_v49  ;;  %v449_v59 = vld [vmem:[%s3343_s1 + $0xd8] sm:$0xff] }
  0x50   : > { %2225 = vmatpush3.bf16.msra.mxu1 %v2224_v38  ;;  %v463_v57 = vld [vmem:[%s3343_s1 + $0x148] sm:$0xff]  ;;  %v480_v60 = vld [vmem:[%s3343_s1 + $0x1d0] sm:$0xff]  ;;  %v481_v61 = vld [vmem:[%s3343_s1 + $0x1d8] sm:$0xff]  ;;  %v2200_v62 = vpack.c.bf16 %v431_v54, %v430_v53  ;;  %v2202_v0 = vpack.c.bf16 %v449_v59, %v448_v58 }
  0x51   : > { %2227 = vmatprep.subr.bf16.mxu1 %v2226_v43  ;;  %v2232_v63 = vpack.c.bf16 %v463_v57, %v462_v55  ;;  %v432_v1 = vld [vmem:[%s3343_s1 + $0x50] sm:$0xff]  ;;  %v433_v2 = vld [vmem:[%s3343_s1 + $0x58] sm:$0xff]  ;;  %v2234_v4 = vpack.c.bf16 %v481_v61, %v480_v60  ;;  %v450_v6 = vld [vmem:[%s3343_s1 + $0xe0] sm:$0xff] }
  0x52   : > { %2197 = vmatpush3.bf16.msra.mxu0 %v2196_v48  ;;  %v464_v3 = vld [vmem:[%s3343_s1 + $0x150] sm:$0xff]  ;;  %v465_v5 = vld [vmem:[%s3343_s1 + $0x158] sm:$0xff]  ;;  %v451_v7 = vld [vmem:[%s3343_s1 + $0xe8] sm:$0xff]  ;;  %v2204_v10 = vpack.c.bf16 %v433_v2, %v432_v1 }
  0x53   : > { %2199 = vmatprep.subr.bf16.mxu0 %v2198_v52  ;;  %v482_v8 = vld [vmem:[%s3343_s1 + $0x1e0] sm:$0xff]  ;;  %v483_v9 = vld [vmem:[%s3343_s1 + $0x1e8] sm:$0xff]  ;;  %v2236_v13 = vpack.c.bf16 %v465_v5, %v464_v3  ;;  %v2206_v14 = vpack.c.bf16 %v451_v7, %v450_v6  ;;  %v452_v19 = vld [vmem:[%s3343_s1 + $0xf0] sm:$0xff] }
  0x54   : > { %2229 = vmatpush3.bf16.msra.mxu1 %v2228_v51  ;;  %v434_v11 = vld [vmem:[%s3343_s1 + $0x60] sm:$0xff]  ;;  %v367_v12 = vld [vmem:[%s2739_s28 + $0x8] sm:$0xff]  ;;  %v2238_v18 = vpack.c.bf16 %v483_v9, %v482_v8  ;;  %v453_v20 = vld [vmem:[%s3343_s1 + $0xf8] sm:$0xff] }
  0x55   : > { %2231 = vmatprep.subr.bf16.mxu1 %v2230_v56  ;;  %v435_v15 = vld [vmem:[%s3343_s1 + $0x68] sm:$0xff]  ;;  %v466_v16 = vld [vmem:[%s3343_s1 + $0x160] sm:$0xff]  ;;  %616 = vmatprep.mubr.f32.mxu0 %v367_v12  ;;  %v369_v21 = vld [vmem:[%s2739_s28 + $0x18] sm:$0xff]  ;;  %v2210_v26 = vpack.c.bf16 %v453_v20, %v452_v19 }
  0x56   : > { %2201 = vmatpush3.bf16.msra.mxu0 %v2200_v62  ;;  %v467_v17 = vld [vmem:[%s3343_s1 + $0x168] sm:$0xff]  ;;  %v484_v22 = vld [vmem:[%s3343_s1 + $0x1f0] sm:$0xff]  ;;  %v485_v23 = vld [vmem:[%s3343_s1 + $0x1f8] sm:$0xff]  ;;  %721 = vmatprep.mubr.f32.mxu1 %v369_v21  ;;  %v2208_v24 = vpack.c.bf16 %v435_v15, %v434_v11 }
  0x57   : > { %2203 = vmatprep.subr.bf16.mxu0 %v2202_v0  ;;  %v2240_v25 = vpack.c.bf16 %v467_v17, %v466_v16  ;;  %v436_v27 = vld [vmem:[%s3343_s1 + $0x70] sm:$0xff]  ;;  %v437_v28 = vld [vmem:[%s3343_s1 + $0x78] sm:$0xff]  ;;  %v2242_v30 = vpack.c.bf16 %v485_v23, %v484_v22  ;;  %v502_v32 = vld [vmem:[%s3343_s1 + $0x280] sm:$0xff] }
  0x58   : > { %2233 = vmatpush3.bf16.msra.mxu1 %v2232_v63  ;;  %v468_v29 = vld [vmem:[%s3343_s1 + $0x170] sm:$0xff]  ;;  %v469_v31 = vld [vmem:[%s3343_s1 + $0x178] sm:$0xff]  ;;  %v503_v33 = vld [vmem:[%s3343_s1 + $0x288] sm:$0xff]  ;;  %v2212_v34 = vpack.c.bf16 %v437_v28, %v436_v27 }
  0x59   : > { %2235 = vmatprep.subr.bf16.mxu1 %v2234_v4  ;;  %v2244_v35 = vpack.c.bf16 %v469_v31, %v468_v29  ;;  %v2246_v36 = vpack.c.bf16 %v503_v33, %v502_v32  ;;  %v486_v37 = vld [vmem:[%s3343_s1 + $0x200] sm:$0xff]  ;;  %v487_v38 = vld [vmem:[%s3343_s1 + $0x208] sm:$0xff]  ;;  %v504_v39 = vld [vmem:[%s3343_s1 + $0x290] sm:$0xff] }
  0x5a   : > { %2205 = vmatpush3.bf16.msra.mxu0 %v2204_v10  ;;  %v505_v40 = vld [vmem:[%s3343_s1 + $0x298] sm:$0xff]  ;;  %v366_v41 = vld [vmem:[%s2739_s28] sm:$0xff]  ;;  %v2248_v42 = vpack.c.bf16 %v487_v38, %v486_v37  ;;  %v368_v43 = vld [vmem:[%s2739_s28 + $0x10] sm:$0xff] }
  0x5b   : > { %2207 = vmatprep.subr.bf16.mxu0 %v2206_v14  ;;  %v488_v44 = vld [vmem:[%s3343_s1 + $0x210] sm:$0xff]  ;;  %v2250_v45 = vpack.c.bf16 %v505_v40, %v504_v39  ;;  %v489_v46 = vld [vmem:[%s3343_s1 + $0x218] sm:$0xff]  ;;  %v518_v47 = vld [vmem:[%s3343_s1 + $0x300] sm:$0xff] }
  0x5c   : > { %2237 = vmatpush3.bf16.msra.mxu1 %v2236_v13  ;;  %v519_v48 = vld [vmem:[%s3343_s1 + $0x308] sm:$0xff]  ;;  %v374_v49 = vld [vmem:[%s2739_s28 + $0x40] sm:$0xff]  ;;  %v376_v53 = vld [vmem:[%s2739_s28 + $0x50] sm:$0xff]  ;;  %v2252_v55 = vpack.c.bf16 %v489_v46, %v488_v44 }
  0x5d   : > { %2239 = vmatprep.subr.bf16.mxu1 %v2238_v18  ;;  %v506_v50 = vld [vmem:[%s3343_s1 + $0x2a0] sm:$0xff]  ;;  %v507_v51 = vld [vmem:[%s3343_s1 + $0x2a8] sm:$0xff]  ;;  %v2278_v52 = vpack.c.bf16 %v519_v48, %v518_v47  ;;  %v373_v54 = vld [vmem:[%s2739_s28 + $0x38] sm:$0xff] }
  0x5e   : > { %2209 = vmatpush3.bf16.msra.mxu0 %v2208_v24  ;;  %v375_v56 = vld [vmem:[%s2739_s28 + $0x48] sm:$0xff]  ;;  %v2254_v57 = vpack.c.bf16 %v507_v51, %v506_v50  ;;  %v490_v58 = vld [vmem:[%s3343_s1 + $0x220] sm:$0xff]  ;;  %v381_v60 = vld [vmem:[%s2739_s28 + $0x78] sm:$0xff] }
  0x5f   : > { %2211 = vmatprep.subr.bf16.mxu0 %v2210_v26  ;;  %v491_v59 = vld [vmem:[%s3343_s1 + $0x228] sm:$0xff]  ;;  %v508_v61 = vld [vmem:[%s3343_s1 + $0x2b0] sm:$0xff]  ;;  %v509_v62 = vld [vmem:[%s3343_s1 + $0x2b8] sm:$0xff] }
  0x60   : > { %2241 = vmatpush3.bf16.msra.mxu1 %v2240_v25  ;;  %v383_v63 = vld [vmem:[%s2739_s28 + $0x88] sm:$0xff]  ;;  %v380_v0 = vld [vmem:[%s2739_s28 + $0x70] sm:$0xff]  ;;  %v2256_v1 = vpack.c.bf16 %v491_v59, %v490_v58  ;;  %v382_v2 = vld [vmem:[%s2739_s28 + $0x80] sm:$0xff]  ;;  %v2258_v3 = vpack.c.bf16 %v509_v62, %v508_v61 }
  0x61   : > { %2243 = vmatprep.subr.bf16.mxu1 %v2242_v30  ;;  %v492_v4 = vld [vmem:[%s3343_s1 + $0x230] sm:$0xff]  ;;  %v493_v5 = vld [vmem:[%s3343_s1 + $0x238] sm:$0xff]  ;;  %v510_v7 = vld [vmem:[%s3343_s1 + $0x2c0] sm:$0xff] }
  0x62   : > { %2213 = vmatpush3.bf16.msra.mxu0 %v2212_v34  ;;  %v388_v6 = vld [vmem:[%s2739_s28 + $0xb0] sm:$0xff]  ;;  %v511_v8 = vld [vmem:[%s3343_s1 + $0x2c8] sm:$0xff]  ;;  %v390_v9 = vld [vmem:[%s2739_s28 + $0xc0] sm:$0xff]  ;;  %v2260_v11 = vpack.c.bf16 %v493_v5, %v492_v4 }
  0x63   : > { %2247 = vmatprep.subr.bf16.mxu0 %v2246_v36  ;;  %v387_v10 = vld [vmem:[%s2739_s28 + $0xa8] sm:$0xff]  ;;  %v389_v12 = vld [vmem:[%s2739_s28 + $0xb8] sm:$0xff]  ;;  %v2262_v13 = vpack.c.bf16 %v511_v8, %v510_v7  ;;  %v494_v14 = vld [vmem:[%s3343_s1 + $0x240] sm:$0xff] }
  0x64   : > { %2245 = vmatpush3.bf16.msra.mxu1 %v2244_v35  ;;  %v495_v15 = vld [vmem:[%s3343_s1 + $0x248] sm:$0xff]  ;;  %v512_v17 = vld [vmem:[%s3343_s1 + $0x2d0] sm:$0xff]  ;;  %v513_v18 = vld [vmem:[%s3343_s1 + $0x2d8] sm:$0xff] }
  0x65   : > { %617 = vmatmul.mubr.f32.vlgmr.msra.gmra.mrb[0].mxu0 %v366_v41  ;;  %2279 = vmatprep.subr.bf16.mxu1 %v2278_v52  ;;  %v395_v16 = vld [vmem:[%s2739_s28 + $0xe8] sm:$0xff]  ;;  %v397_v19 = vld [vmem:[%s2739_s28 + $0xf8] sm:$0xff]  ;;  %v394_v20 = vld [vmem:[%s2739_s28 + $0xe0] sm:$0xff]  ;;  %v2264_v21 = vpack.c.bf16 %v495_v15, %v494_v14  ;;  %v2266_v23 = vpack.c.bf16 %v513_v18, %v512_v17 }
  0x66   : > { %2249 = vmatpush3.bf16.msra.mxu0 %v2248_v42  ;;  %621 = vmatprep.mubr.f32.mxu0 %v374_v49  ;;  %v396_v22 = vld [vmem:[%s2739_s28 + $0xf0] sm:$0xff]  ;;  %v497_v25 = vld [vmem:[%s3343_s1 + $0x258] sm:$0xff]  ;;  %v402_v26 = vld [vmem:[%s2739_s28 + $0x120] sm:$0xff] }
  0x67   : > { %722 = vmatmul.mubr.f32.vlgmr.msra.gmra.mrb[0].mxu1 %v368_v43  ;;  %2251 = vmatprep.subr.bf16.mxu0 %v2250_v45  ;;  %v496_v24 = vld [vmem:[%s3343_s1 + $0x250] sm:$0xff]  ;;  %v514_v27 = vld [vmem:[%s3343_s1 + $0x2e0] sm:$0xff]  ;;  %v515_v28 = vld [vmem:[%s3343_s1 + $0x2e8] sm:$0xff] }
  0x68   : > { %726 = vmatprep.mubr.f32.mxu1 %v376_v53  ;;  %2281 = vmatpush3.bf16.msra.mxu1 %v2278_v52  ;;  %v404_v29 = vld [vmem:[%s2739_s28 + $0x130] sm:$0xff]  ;;  %v401_v30 = vld [vmem:[%s2739_s28 + $0x118] sm:$0xff]  ;;  %v2268_v31 = vpack.c.bf16 %v497_v25, %v496_v24  ;;  %v403_v32 = vld [vmem:[%s2739_s28 + $0x128] sm:$0xff]  ;;  %v2270_v33 = vpack.c.bf16 %v515_v28, %v514_v27 }
  0x69   : > { %622 = vmatmul.mubr.f32.gmra.mrb[2].mxu0 %v373_v54  ;;  %v498_v34 = vld [vmem:[%s3343_s1 + $0x260] sm:$0xff]  ;;  %v499_v35 = vld [vmem:[%s3343_s1 + $0x268] sm:$0xff]  ;;  %v409_v36 = vld [vmem:[%s2739_s28 + $0x158] sm:$0xff] }
  0x6a   : > { %2253 = vmatpush3.bf16.msra.mxu0 %v2252_v55  ;;  %626 = vmatprep.mubr.f32.mxu0 %v381_v60  ;;  %v516_v37 = vld [vmem:[%s3343_s1 + $0x2f0] sm:$0xff]  ;;  %v517_v38 = vld [vmem:[%s3343_s1 + $0x2f8] sm:$0xff]  ;;  %v411_v39 = vld [vmem:[%s2739_s28 + $0x168] sm:$0xff]  ;;  %v2272_v41 = vpack.c.bf16 %v499_v35, %v498_v34 }
  0x6b   : > { %727 = vmatmul.mubr.f32.gmra.mrb[2].mxu1 %v375_v56  ;;  %2255 = vmatprep.subr.bf16.mxu0 %v2254_v57  ;;  %v408_v40 = vld [vmem:[%s2739_s28 + $0x150] sm:$0xff]  ;;  %v410_v42 = vld [vmem:[%s2739_s28 + $0x160] sm:$0xff]  ;;  %v2274_v43 = vpack.c.bf16 %v517_v38, %v516_v37  ;;  %v501_v45 = vld [vmem:[%s3343_s1 + $0x278] sm:$0xff] }
  0x6c   : > { %731 = vmatprep.mubr.f32.mxu1 %v383_v63  ;;  %v500_v44 = vld [vmem:[%s3343_s1 + $0x270] sm:$0xff]  ;;  %v418_v47 = vld [vmem:[%s2739_s28 + $0x1a0] sm:$0xff]  ;;  %v415_v48 = vld [vmem:[%s2739_s28 + $0x188] sm:$0xff] }
  0x6d   : > { %627 = vmatmul.mubr.f32.gmra.mrb[4].mxu0 %v380_v0  ;;  %v416_v46 = vld [vmem:[%s2739_s28 + $0x190] sm:$0xff]  ;;  %v2276_v49 = vpack.c.bf16 %v501_v45, %v500_v44  ;;  %v417_v50 = vld [vmem:[%s2739_s28 + $0x198] sm:$0xff]  ;;  %v371_v51 = vld [vmem:[%s2739_s28 + $0x28] sm:$0xff] }
  0x6e   : > { %2257 = vmatpush3.bf16.msra.mxu0 %v2256_v1  ;;  %631 = vmatprep.mubr.f32.mxu0 %v388_v6  ;;  %v372_v52 = vld [vmem:[%s2739_s28 + $0x30] sm:$0xff]  ;;  %v370_v53 = vld [vmem:[%s2739_s28 + $0x20] sm:$0xff]  ;;  %v379_v55 = vld [vmem:[%s2739_s28 + $0x68] sm:$0xff] }
  0x6f   : > { %732 = vmatmul.mubr.f32.gmra.mrb[4].mxu1 %v382_v2  ;;  %2259 = vmatprep.subr.bf16.mxu0 %v2258_v3  ;;  %v378_v54 = vld [vmem:[%s2739_s28 + $0x60] sm:$0xff]  ;;  %v377_v57 = vld [vmem:[%s2739_s28 + $0x58] sm:$0xff]  ;;  %v400_v60 = vld [vmem:[%s2739_s28 + $0x110] sm:$0xff] }
  0x70   : > { %736 = vmatprep.mubr.f32.mxu1 %v390_v9  ;;  %v386_v56 = vld [vmem:[%s2739_s28 + $0xa0] sm:$0xff]  ;;  %v385_v58 = vld [vmem:[%s2739_s28 + $0x98] sm:$0xff]  ;;  %v384_v61 = vld [vmem:[%s2739_s28 + $0x90] sm:$0xff] }
  0x71   : > { %632 = vmatmul.mubr.f32.gmra.mrb[6].mxu0 %v387_v10  ;;  %v393_v59 = vld [vmem:[%s2739_s28 + $0xd8] sm:$0xff]  ;;  %v392_v62 = vld [vmem:[%s2739_s28 + $0xd0] sm:$0xff]  ;;  %v407_v63 = vld [vmem:[%s2739_s28 + $0x148] sm:$0xff] }
  0x72   : > { %2261 = vmatpush3.bf16.msra.mxu0 %v2260_v11  ;;  %636 = vmatprep.mubr.f32.mxu0 %v395_v16  ;;  %v414_v0 = vld [vmem:[%s2739_s28 + $0x180] sm:$0xff]  ;;  %v391_v1 = vld [vmem:[%s2739_s28 + $0xc8] sm:$0xff]  ;;  %v421_v3 = vld [vmem:[%s2739_s28 + $0x1b8] sm:$0xff] }
  0x73   : > { %737 = vmatmul.mubr.f32.gmra.mrb[6].mxu1 %v389_v12  ;;  %2263 = vmatprep.subr.bf16.mxu0 %v2262_v13  ;;  %v399_v2 = vld [vmem:[%s2739_s28 + $0x108] sm:$0xff]  ;;  %v398_v4 = vld [vmem:[%s2739_s28 + $0x100] sm:$0xff]  ;;  %v405_v6 = vld [vmem:[%s2739_s28 + $0x138] sm:$0xff] }
  0x74   : > { %741 = vmatprep.mubr.f32.mxu1 %v397_v19  ;;  %v406_v5 = vld [vmem:[%s2739_s28 + $0x140] sm:$0xff]  ;;  %v413_v7 = vld [vmem:[%s2739_s28 + $0x178] sm:$0xff]  ;;  %v412_v8 = vld [vmem:[%s2739_s28 + $0x170] sm:$0xff] }
  0x75   : > { %637 = vmatmul.mubr.f32.gmra.mrb[8].mxu0 %v394_v20  ;;  %v420_v9 = vld [vmem:[%s2739_s28 + $0x1b0] sm:$0xff]  ;;  %v419_v10 = vld [vmem:[%s2739_s28 + $0x1a8] sm:$0xff]  ;;  %v980_v11 = vld [vmem:[%s3345_s3] sm:$0xff] }
  0x76   : > { %2265 = vmatpush3.bf16.msra.mxu0 %v2264_v21  ;;  %641 = vmatprep.mubr.f32.mxu0 %v402_v26  ;;  %v981_v12 = vld [vmem:[%s3345_s3 + $0x8] sm:$0xff]  ;;  %v982_v14 = vld [vmem:[%s3345_s3 + $0x10] sm:$0xff]  ;;  %v983_v15 = vld [vmem:[%s3345_s3 + $0x18] sm:$0xff] }
  0x77   : > { %742 = vmatmul.mubr.f32.gmra.mrb[8].mxu1 %v396_v22  ;;  %2267 = vmatprep.subr.bf16.mxu0 %v2266_v23  ;;  %v2282_v13 = vpack.c.bf16 %v981_v12, %v980_v11  ;;  %v2286_v16 = vpack.c.bf16 %v983_v15, %v982_v14  ;;  %v984_v17 = vld [vmem:[%s3345_s3 + $0x20] sm:$0xff]  ;;  %v985_v18 = vld [vmem:[%s3345_s3 + $0x28] sm:$0xff]  ;;  %v986_v20 = vld [vmem:[%s3345_s3 + $0x30] sm:$0xff] }
  0x78   : > { %746 = vmatprep.mubr.f32.mxu1 %v404_v29  ;;  %v2290_v19 = vpack.c.bf16 %v985_v18, %v984_v17  ;;  %v987_v21 = vld [vmem:[%s3345_s3 + $0x38] sm:$0xff]  ;;  %v1133_v23 = vld [vmem:[%s3347_s5] sm:$0xff]  ;;  %v1134_v24 = vld [vmem:[%s3347_s5 + $0x8] sm:$0xff] }
  0x79   : > { %642 = vmatmul.mubr.f32.gmra.mrb[10].mxu0 %v401_v30  ;;  %2283 = vmatprep.subr.bf16.mxu1 %v2282_v13  ;;  %v2294_v22 = vpack.c.bf16 %v987_v21, %v986_v20  ;;  %v1135_v25 = vld [vmem:[%s3347_s5 + $0x10] sm:$0xff]  ;;  %v2298_v26 = vpack.c.bf16 %v1134_v24, %v1133_v23  ;;  %v1136_v27 = vld [vmem:[%s3347_s5 + $0x18] sm:$0xff]  ;;  %v1137_v29 = vld [vmem:[%s3347_s5 + $0x20] sm:$0xff] }
  0x7a   : > { %2269 = vmatpush3.bf16.msra.mxu0 %v2268_v31  ;;  %646 = vmatprep.mubr.f32.mxu0 %v409_v36  ;;  %v2302_v28 = vpack.c.bf16 %v1136_v27, %v1135_v25  ;;  %v1138_v30 = vld [vmem:[%s3347_s5 + $0x28] sm:$0xff] }
  0x7b   : > { %747 = vmatmul.mubr.f32.gmra.mrb[10].mxu1 %v403_v32  ;;  %2271 = vmatprep.subr.bf16.mxu0 %v2270_v33  ;;  %v2306_v31 = vpack.c.bf16 %v1138_v30, %v1137_v29  ;;  %v1800_v33 = vld [vmem:[%s3344_s2] ss:$0 sm:$0xff] }
  0x7c   : > { %751 = vmatprep.mubr.f32.mxu1 %v411_v39 }
  0x7d   : > { %647 = vmatmul.mubr.f32.gmra.mrb[12].mxu0 %v408_v40 }
  0x7e   : > { %2273 = vmatpush3.bf16.msra.mxu0 %v2272_v41  ;;  %651 = vmatprep.mubr.f32.mxu0 %v416_v46 }
  0x7f   : > { %752 = vmatmul.mubr.f32.gmra.mrb[12].mxu1 %v410_v42  ;;  %2275 = vmatprep.subr.bf16.mxu0 %v2274_v43 }
  0x80   : > { %756 = vmatprep.mubr.f32.mxu1 %v418_v47 }
  0x81   : > { %652 = vmatmul.mubr.f32.gmra.mrb[14].mxu0 %v415_v48 }
  0x82   : > { %2277 = vmatpush3.bf16.msra.mxu0 %v2276_v49  ;;  %826 = vmatprep.mubr.f32.mxu0 %v371_v51 }
  0x83   : > { %757 = vmatmul.mubr.f32.gmra.mrb[14].mxu1 %v417_v50  ;;  %2299 = vmatprep.subr.bf16.mxu0 %v2298_v26 }
  0x84   : > { %2086 = vmatprep.mubr.msk.f32.mxu1 %vm527_vm0, %v372_v52 }
  0x85   : > { %827 = vmatmul.mubr.f32.vlgmr.msra.gmra.mrb[16].mxu0 %v370_v53 }
  0x86   : > { %831 = vmatprep.mubr.f32.mxu0 %v378_v54  ;;  %2301 = vmatpush3.bf16.msra.mxu0 %v2298_v26 }
  0x87   : > { %2087 = vmatmul.mubr.msk.f32.vlgmr.msra.gmra.mrb[16].mxu1 %vm527_vm0, %v379_v55  ;;  %2303 = vmatprep.subr.bf16.mxu0 %v2302_v28 }
  0x88   : > { %2089 = vmatprep.mubr.msk.f32.mxu1 %vm527_vm0, %v386_v56  ;;  %2285 = vmatpush3.bf16.msra.mxu1 %v2282_v13 }
  0x89   : > { %832 = vmatmul.mubr.f32.gmra.mrb[18].mxu0 %v377_v57  ;;  %2287 = vmatprep.subr.bf16.mxu1 %v2286_v16 }
  0x8a   : > { %836 = vmatprep.mubr.f32.mxu0 %v385_v58  ;;  %2305 = vmatpush3.bf16.msra.mxu0 %v2302_v28 }
  0x8b   : > { %2090 = vmatmul.mubr.msk.f32.gmra.mrb[18].mxu1 %vm527_vm0, %v393_v59  ;;  %2307 = vmatprep.subr.bf16.mxu0 %v2306_v31 }
  0x8c   : > { %2092 = vmatprep.mubr.msk.f32.mxu1 %vm527_vm0, %v400_v60  ;;  %2289 = vmatpush3.bf16.msra.mxu1 %v2286_v16 }
  0x8d   : > { %837 = vmatmul.mubr.f32.gmra.mrb[20].mxu0 %v384_v61  ;;  %2291 = vmatprep.subr.bf16.mxu1 %v2290_v19 }
  0x8e   : > { %841 = vmatprep.mubr.f32.mxu0 %v392_v62  ;;  %2309 = vmatpush3.bf16.msra.mxu0 %v2306_v31 }
  0x8f   : > { %2093 = vmatmul.mubr.msk.f32.gmra.mrb[20].mxu1 %vm527_vm0, %v407_v63 }
  0x90   : > { %2095 = vmatprep.mubr.msk.f32.mxu1 %vm527_vm0, %v414_v0  ;;  %2293 = vmatpush3.bf16.msra.mxu1 %v2290_v19 }
  0x91   : > { %842 = vmatmul.mubr.f32.gmra.mrb[22].mxu0 %v391_v1  ;;  %2295 = vmatprep.subr.bf16.mxu1 %v2294_v22 }
  0x92   : > { %846 = vmatprep.mubr.f32.mxu0 %v399_v2 }
  0x93   : > { %2096 = vmatmul.mubr.msk.f32.gmra.mrb[22].mxu1 %vm527_vm0, %v421_v3 }
  0x94   : > { %2297 = vmatpush3.bf16.msra.mxu1 %v2294_v22 }
  0x95   : > { %847 = vmatmul.mubr.f32.gmra.mrb[24].mxu0 %v398_v4 }
  0x96   : > { %851 = vmatprep.mubr.f32.mxu0 %v406_v5 }
  0x99   : > { %852 = vmatmul.mubr.f32.gmra.mrb[26].mxu0 %v405_v6 }
  0x9a   : > { %856 = vmatprep.mubr.f32.mxu0 %v413_v7 }
  0x9d   : > { %857 = vmatmul.mubr.f32.gmra.mrb[28].mxu0 %v412_v8 }
  0x9e   : > { %861 = vmatprep.mubr.f32.mxu0 %v420_v9 }
  0xa1   : > { %862 = vmatmul.mubr.f32.gmra.mrb[30].mxu0 %v419_v10 }
 0x138   : > { %v1888_v32 = vpop.f32.mrb[0].mxu0 }
 0x139   : > { %v1889_v34 = vpop.f32.mrb[1].mxu0 }
 0x13a   : > { %v1944_v35 = vpop.f32.mrb[0].mxu1  ;;  %v1890_v36 = vadd.f32 %v1889_v34, %v1888_v32 }
 0x13b   : > { %v1945_v37 = vpop.f32.mrb[1].mxu1 }
 0x13c   : > { %v1946_v38 = vadd.f32 %v1945_v37, %v1944_v35  ;;  %v619_v39 = vadd.f32 %v1890_v36, %v1800_v33  ;;  %v1891_v40 = vpop.f32.mrb[2].mxu0 }
 0x13d   : > { %v1892_v41 = vpop.f32.mrb[3].mxu0 }
 0x13e   : > { %v1947_v42 = vpop.f32.mrb[2].mxu1  ;;  %v724_v43 = vadd.f32 %v1946_v38, %v619_v39  ;;  %v1893_v44 = vadd.f32 %v1892_v41, %v1891_v40 }
 0x13f   : > { %v1948_v45 = vpop.f32.mrb[3].mxu1 }
 0x140   : > { %v1949_v46 = vadd.f32 %v1948_v45, %v1947_v42  ;;  %v624_v47 = vadd.f32 %v1893_v44, %v1800_v33  ;;  %v1894_v48 = vpop.f32.mrb[4].mxu0 }
 0x141   : > { %v1895_v49 = vpop.f32.mrb[5].mxu0 }
 0x142   : > { %v1950_v50 = vpop.f32.mrb[4].mxu1  ;;  %v729_v51 = vadd.f32 %v1949_v46, %v624_v47  ;;  %v1896_v52 = vadd.f32 %v1895_v49, %v1894_v48 }
 0x143   : > { %v1951_v53 = vpop.f32.mrb[5].mxu1 }
 0x144   : > { %v1952_v54 = vadd.f32 %v1951_v53, %v1950_v50  ;;  %v629_v55 = vadd.f32 %v1896_v52, %v1800_v33  ;;  %v1897_v56 = vpop.f32.mrb[6].mxu0 }
 0x145   : > { %v1898_v57 = vpop.f32.mrb[7].mxu0 }
 0x146   : > { %v1953_v58 = vpop.f32.mrb[6].mxu1  ;;  %v734_v59 = vadd.f32 %v1952_v54, %v629_v55  ;;  %v1899_v60 = vadd.f32 %v1898_v57, %v1897_v56 }
 0x147   : > { %v1954_v61 = vpop.f32.mrb[7].mxu1 }
 0x148   : > { %v1955_v62 = vadd.f32 %v1954_v61, %v1953_v58  ;;  %v634_v63 = vadd.f32 %v1899_v60, %v1800_v33  ;;  %v1900_v0 = vpop.f32.mrb[8].mxu0 }
 0x149   : > { %v1901_v1 = vpop.f32.mrb[9].mxu0 }
 0x14a   : > { %v1956_v2 = vpop.f32.mrb[8].mxu1  ;;  %v739_v3 = vadd.f32 %v1955_v62, %v634_v63  ;;  %v1902_v4 = vadd.f32 %v1901_v1, %v1900_v0 }
 0x14b   : > { %v1957_v5 = vpop.f32.mrb[9].mxu1 }
 0x14c   : > { %v1958_v6 = vadd.f32 %v1957_v5, %v1956_v2  ;;  %v639_v7 = vadd.f32 %v1902_v4, %v1800_v33  ;;  %v1903_v8 = vpop.f32.mrb[10].mxu0 }
 0x14d   : > { %v1904_v9 = vpop.f32.mrb[11].mxu0 }
 0x14e   : > { %v1959_v10 = vpop.f32.mrb[10].mxu1  ;;  %v744_v11 = vadd.f32 %v1958_v6, %v639_v7  ;;  %v1905_v12 = vadd.f32 %v1904_v9, %v1903_v8 }
 0x14f   : > { %v1960_v13 = vpop.f32.mrb[11].mxu1 }
 0x150   : > { %v1961_v14 = vadd.f32 %v1960_v13, %v1959_v10  ;;  %v644_v15 = vadd.f32 %v1905_v12, %v1800_v33  ;;  %v1906_v16 = vpop.f32.mrb[12].mxu0 }
 0x151   : > { %v1907_v17 = vpop.f32.mrb[13].mxu0 }
 0x152   : > { %v1962_v18 = vpop.f32.mrb[12].mxu1  ;;  %v749_v19 = vadd.f32 %v1961_v14, %v644_v15  ;;  %v1908_v20 = vadd.f32 %v1907_v17, %v1906_v16 }
 0x153   : > { %v1963_v21 = vpop.f32.mrb[13].mxu1 }
 0x154   : > { %v1964_v22 = vadd.f32 %v1963_v21, %v1962_v18  ;;  %v649_v23 = vadd.f32 %v1908_v20, %v1800_v33  ;;  %v1909_v24 = vpop.f32.mrb[14].mxu0 }
 0x155   : > { %v1910_v25 = vpop.f32.mrb[15].mxu0 }
 0x156   : > { %v1965_v26 = vpop.f32.mrb[14].mxu1  ;;  %v754_v27 = vadd.f32 %v1964_v22, %v649_v23  ;;  %v1911_v28 = vadd.f32 %v1910_v25, %v1909_v24  ;;  %v1139_v25 = vld [vmem:[%s3347_s5 + $0x30] sm:$0xff] }
 0x157   : > { %v1966_v29 = vpop.f32.mrb[15].mxu1 }
 0x158   : > { %v1967_v30 = vadd.f32 %v1966_v29, %v1965_v26  ;;  %v654_v31 = vadd.f32 %v1911_v28, %v1800_v33  ;;  %v2000_v32 = vpop.f32.mrb[16].mxu0  ;;  %v1140_v26 = vld [vmem:[%s3347_s5 + $0x38] sm:$0xff]  ;;  %v1285_v28 = vld [vmem:[%s3349_s7] sm:$0xff]  ;;  %v1286_v29 = vld [vmem:[%s3349_s7 + $0x8] sm:$0xff] }
 0x159   : > { %v2001_v34 = vpop.f32.mrb[17].mxu0 }
 0x15a   : > { %v2088_v35 = vpop.f32.mrb[16].mxu1  ;;  %v759_v36 = vadd.f32 %v1967_v30, %v654_v31  ;;  %v2002_v37 = vadd.f32 %v2001_v34, %v2000_v32  ;;  %v1287_v30 = vld [vmem:[%s3349_s7 + $0x10] sm:$0xff]  ;;  %v2314_v31 = vpack.c.bf16 %v1286_v29, %v1285_v28  ;;  %v1288_v32 = vld [vmem:[%s3349_s7 + $0x18] sm:$0xff] }
 0x15b   : > { %v933_v38 = vpop.f32.mrb[17].mxu1  ;;  %v2318_v34 = vpack.c.bf16 %v1288_v32, %v1287_v30 }
 0x15c   : > { %v2003_v39 = vpop.f32.mrb[18].mxu0  ;;  %v829_v40 = vadd.f32 %v2002_v37, %v724_v43  ;;  %2315 = vmatprep.subr.bf16.mxu1 %v2314_v31 }
 0x15d   : > { %v2004_v41 = vpop.f32.mrb[19].mxu0 }
 0x15e   : > { %v2091_v42 = vpop.f32.mrb[18].mxu1  ;;  %v2005_v44 = vadd.f32 %v2004_v41, %v2003_v39  ;;  %v934_v45 = vadd.f32 %v933_v38, %v829_v40  ;;  %v1809_v38 = vld [vmem:[%s3346_s4] ss:$0 sm:$0xff] }
 0x15f   : > { %v943_v46 = vpop.f32.mrb[19].mxu1 }
 0x160   : > { %v834_v47 = vadd.f32 %v2005_v44, %v729_v51  ;;  %v972_v48 = vmax.f32 %v934_v45, 0.0  ;;  %v2006_v49 = vpop.f32.mrb[20].mxu0 }
 0x161   : > { %v2007_v50 = vpop.f32.mrb[21].mxu0 }
 0x162   : > { %v2094_v52 = vpop.f32.mrb[20].mxu1  ;;  %v939_v33 = vadd.f32 %v2088_v35, %v834_v47  ;;  %v2008_v53 = vadd.f32 %v2007_v50, %v2006_v49  ;;  %2114 = vmatprep.mubr.msk.f32.mxu1 %vm995_vm1, %v972_v48  ;;  %v1289_v35 = vld [vmem:[%s3349_s7 + $0x20] sm:$0xff] }
 0x163   : > { %v953_v54 = vpop.f32.mrb[21].mxu1 }
 0x164   : > { %v973_v55 = vmax.f32 %v939_v33, 0.0  ;;  %v2009_v56 = vpop.f32.mrb[22].mxu0  ;;  %v839_v57 = vadd.f32 %v2008_v53, %v734_v59 }
 0x165   : > { %v2010_v43 = vpop.f32.mrb[23].mxu0 }
 0x166   : > { %v2097_v58 = vpop.f32.mrb[22].mxu1  ;;  %v2011_v60 = vadd.f32 %v2010_v43, %v2009_v56  ;;  %v944_v61 = vadd.f32 %v943_v46, %v839_v57  ;;  %2115 = vmatmul.mubr.msk.f32.vlgmr.msra.gmra.mrb[24].mxu1 %vm995_vm1, %v973_v55 }
 0x167   : > { %v963_v62 = vpop.f32.mrb[23].mxu1  ;;  %2317 = vmatpush3.bf16.msra.mxu1 %v2314_v31 }
 0x168   : > { %v844_v51 = vadd.f32 %v2011_v60, %v739_v3  ;;  %v974_v63 = vmax.f32 %v944_v61, 0.0  ;;  %v2012_v0 = vpop.f32.mrb[24].mxu0  ;;  %2319 = vmatprep.subr.bf16.mxu1 %v2318_v34 }
 0x169   : > { %v2013_v1 = vpop.f32.mrb[25].mxu0 }
 0x16a   : > { %v949_v2 = vadd.f32 %v2091_v42, %v844_v51  ;;  %v2014_v4 = vadd.f32 %v2013_v1, %v2012_v0  ;;  %2117 = vmatprep.mubr.msk.f32.mxu1 %vm995_vm1, %v974_v63  ;;  %v1291_v63 = vld [vmem:[%s3349_s7 + $0x30] sm:$0xff]  ;;  %v1292_v0 = vld [vmem:[%s3349_s7 + $0x38] sm:$0xff] }
 0x16b   : > { %2321 = vmatpush3.bf16.msra.mxu1 %v2318_v34  ;;  %v2326_v1 = vpack.c.bf16 %v1292_v0, %v1291_v63 }
 0x16c   : > { %v975_v5 = vmax.f32 %v949_v2, 0.0  ;;  %v2015_v6 = vpop.f32.mrb[26].mxu0  ;;  %v849_v7 = vadd.f32 %v2014_v4, %v744_v11  ;;  %v1818_v2 = vld [vmem:[%s3348_s6] ss:$0 sm:$0xff] }
 0x16d   : > { %v2016_v8 = vpop.f32.mrb[27].mxu0 }
 0x16e   : > { %v2017_v59 = vadd.f32 %v2016_v8, %v2015_v6  ;;  %v954_v9 = vadd.f32 %v953_v54, %v849_v7  ;;  %2118 = vmatmul.mubr.msk.f32.gmra.mrb[26].mxu1 %vm995_vm1, %v975_v5 }
 0x170   : > { %v854_v10 = vadd.f32 %v2017_v59, %v749_v19  ;;  %v976_v12 = vmax.f32 %v954_v9, 0.0  ;;  %v2018_v13 = vpop.f32.mrb[28].mxu0 }
 0x171   : > { %v2019_v14 = vpop.f32.mrb[29].mxu0 }
 0x172   : > { %v959_v3 = vadd.f32 %v2094_v52, %v854_v10  ;;  %v2020_v15 = vadd.f32 %v2019_v14, %v2018_v13  ;;  %2120 = vmatprep.mubr.msk.f32.mxu1 %vm995_vm1, %v976_v12 }
 0x174   : > { %v977_v16 = vmax.f32 %v959_v3, 0.0  ;;  %v2021_v17 = vpop.f32.mrb[30].mxu0  ;;  %v859_v18 = vadd.f32 %v2020_v15, %v754_v27  ;;  %v2310_v27 = vpack.c.bf16 %v1140_v26, %v1139_v25  ;;  %v1827_v26 = vld [vmem:[%s3350_s8] ss:$0 sm:$0xff] }
 0x175   : > { %v2022_v20 = vpop.f32.mrb[31].mxu0 }
 0x176   : > { %v2023_v21 = vadd.f32 %v2022_v20, %v2021_v17  ;;  %v964_v22 = vadd.f32 %v963_v62, %v859_v18  ;;  %2121 = vmatmul.mubr.msk.f32.gmra.mrb[28].mxu1 %vm995_vm1, %v977_v16  ;;  %2311 = vmatprep.subr.bf16.mxu0 %v2310_v27 }
 0x177   : > { %2313 = vmatpush3.bf16.msra.mxu0 %v2310_v27 }
 0x178   : > { %v864_v11 = vadd.f32 %v2023_v21, %v759_v36  ;;  %v978_v23 = vmax.f32 %v964_v22, 0.0  ;;  %v1290_v36 = vld [vmem:[%s3349_s7 + $0x28] sm:$0xff] }
 0x179   : > { %v2322_v37 = vpack.c.bf16 %v1290_v36, %v1289_v35 }
 0x17a   : > { %v969_v24 = vadd.f32 %v2097_v58, %v864_v11  ;;  %2123 = vmatprep.mubr.msk.f32.mxu1 %vm995_vm1, %v978_v23 }
 0x17b   : > { %2323 = vmatprep.subr.bf16.mxu1 %v2322_v37 }
 0x17c   : > { %v979_v19 = vmax.f32 %v969_v24, 0.0  ;;  %2325 = vmatpush3.bf16.msra.mxu1 %v2322_v37 }
 0x17d   : > { %2327 = vmatprep.subr.bf16.mxu1 %v2326_v1 }
 0x17e   : > { %2124 = vmatmul.mubr.msk.f32.gmra.mrb[30].mxu1 %vm995_vm1, %v979_v19 }
 0x180   : > { %2329 = vmatpush3.bf16.msra.mxu1 %v2326_v1 }
 0x239   : > { %v2116_v39 = vpop.f32.mrb[24].mxu1 }
 0x23a   : > { %v1092_v40 = vadd.f32 %v2116_v39, %v1809_v38  ;;  %v1086_v41 = vpop.f32.mrb[25].mxu1 }
 0x23b   : > { %v1087_v42 = vadd.f32 %v1809_v38, %v1086_v41 }
 0x23c   : > { %v1126_v45 = vmax.f32 %v1092_v40, 0.0 }
 0x23d   : > { %v1125_v44 = vmax.f32 %v1087_v42, 0.0 }
 0x23f   : > { %2142 = vmatprep.mubr.msk.f32.mxu0 %vm995_vm1, %v1125_v44 }
 0x240   : > { %2143 = vmatmul.mubr.msk.f32.vlgmr.msra.gmra.mrb[32].mxu0 %vm995_vm1, %v1126_v45 }
 0x241   : > { %v2119_v46 = vpop.f32.mrb[26].mxu1 }
 0x242   : > { %v1102_v47 = vadd.f32 %v2119_v46, %v1809_v38  ;;  %v1096_v48 = vpop.f32.mrb[27].mxu1 }
 0x243   : > { %v1097_v49 = vadd.f32 %v1809_v38, %v1096_v48 }
 0x244   : > { %v1128_v52 = vmax.f32 %v1102_v47, 0.0 }
 0x245   : > { %v1127_v50 = vmax.f32 %v1097_v49, 0.0 }
 0x247   : > { %2145 = vmatprep.mubr.msk.f32.mxu0 %vm995_vm1, %v1127_v50 }
 0x248   : > { %2146 = vmatmul.mubr.msk.f32.gmra.mrb[34].mxu0 %vm995_vm1, %v1128_v52 }
 0x249   : > { %v2122_v33 = vpop.f32.mrb[28].mxu1 }
 0x24a   : > { %v1112_v53 = vadd.f32 %v2122_v33, %v1809_v38  ;;  %v1106_v54 = vpop.f32.mrb[29].mxu1 }
 0x24b   : > { %v1107_v55 = vadd.f32 %v1809_v38, %v1106_v54 }
 0x24c   : > { %v1130_v57 = vmax.f32 %v1112_v53, 0.0 }
 0x24d   : > { %v1129_v56 = vmax.f32 %v1107_v55, 0.0 }
 0x24f   : > { %2148 = vmatprep.mubr.msk.f32.mxu0 %vm995_vm1, %v1129_v56 }
 0x250   : > { %2149 = vmatmul.mubr.msk.f32.gmra.mrb[36].mxu0 %vm995_vm1, %v1130_v57 }
 0x251   : > { %v2125_v43 = vpop.f32.mrb[30].mxu1 }
 0x252   : > { %v1122_v58 = vadd.f32 %v2125_v43, %v1809_v38  ;;  %v1116_v60 = vpop.f32.mrb[31].mxu1 }
 0x253   : > { %v1117_v61 = vadd.f32 %v1809_v38, %v1116_v60 }
 0x254   : > { %v1132_v51 = vmax.f32 %v1122_v58, 0.0 }
 0x255   : > { %v1131_v62 = vmax.f32 %v1117_v61, 0.0 }
 0x257   : > { %2151 = vmatprep.mubr.msk.f32.mxu0 %vm995_vm1, %v1131_v62 }
 0x258   : > { %2152 = vmatmul.mubr.msk.f32.gmra.mrb[38].mxu0 %vm995_vm1, %v1132_v51 }
 0x313   : > { %v2144_v4 = vpop.f32.mrb[32].mxu0 }
 0x314   : > { %v1244_v5 = vadd.f32 %v2144_v4, %v1818_v2  ;;  %v1238_v6 = vpop.f32.mrb[33].mxu0 }
 0x315   : > { %v1239_v7 = vadd.f32 %v1818_v2, %v1238_v6 }
 0x316   : > { %v1278_v59 = vmax.f32 %v1244_v5, 0.0 }
 0x317   : > { %v1277_v8 = vmax.f32 %v1239_v7, 0.0 }
 0x319   : > { %2170 = vmatprep.mubr.msk.f32.mxu1 %vm995_vm1, %v1277_v8 }
 0x31a   : > { %2171 = vmatmul.mubr.msk.f32.vlgmr.msra.gmra.mrb[32].mxu1 %vm995_vm1, %v1278_v59 }
 0x31b   : > { %v2147_v9 = vpop.f32.mrb[34].mxu0 }
 0x31c   : > { %v1254_v10 = vadd.f32 %v2147_v9, %v1818_v2  ;;  %v1248_v12 = vpop.f32.mrb[35].mxu0 }
 0x31d   : > { %v1249_v13 = vadd.f32 %v1818_v2, %v1248_v12 }
 0x31e   : > { %v1280_v3 = vmax.f32 %v1254_v10, 0.0 }
 0x31f   : > { %v1279_v14 = vmax.f32 %v1249_v13, 0.0 }
 0x321   : > { %2173 = vmatprep.mubr.msk.f32.mxu1 %vm995_vm1, %v1279_v14 }
 0x322   : > { %2174 = vmatmul.mubr.msk.f32.gmra.mrb[34].mxu1 %vm995_vm1, %v1280_v3 }
 0x323   : > { %v2150_v15 = vpop.f32.mrb[36].mxu0 }
 0x324   : > { %v1264_v16 = vadd.f32 %v2150_v15, %v1818_v2  ;;  %v1258_v17 = vpop.f32.mrb[37].mxu0 }
 0x325   : > { %v1259_v18 = vadd.f32 %v1818_v2, %v1258_v17 }
 0x326   : > { %v1282_v21 = vmax.f32 %v1264_v16, 0.0 }
 0x327   : > { %v1281_v20 = vmax.f32 %v1259_v18, 0.0 }
 0x329   : > { %2176 = vmatprep.mubr.msk.f32.mxu1 %vm995_vm1, %v1281_v20 }
 0x32a   : > { %2177 = vmatmul.mubr.msk.f32.gmra.mrb[36].mxu1 %vm995_vm1, %v1282_v21 }
 0x32b   : > { %v2153_v22 = vpop.f32.mrb[38].mxu0 }
 0x32c   : > { %v1274_v11 = vadd.f32 %v2153_v22, %v1818_v2  ;;  %v1268_v23 = vpop.f32.mrb[39].mxu0 }
 0x32d   : > { %v1269_v24 = vadd.f32 %v1818_v2, %v1268_v23 }
 0x32e   : > { %v1284_v25 = vmax.f32 %v1274_v11, 0.0 }
 0x32f   : > { %v1283_v19 = vmax.f32 %v1269_v24, 0.0 }
 0x331   : > { %2179 = vmatprep.mubr.msk.f32.mxu1 %vm995_vm1, %v1283_v19 }
 0x332   : > { %2180 = vmatmul.mubr.msk.f32.gmra.mrb[38].mxu1 %vm995_vm1, %v1284_v25 }
 0x3ed   : > { %v2172_v27 = vpop.f32.mrb[32].mxu1 }
 0x3ee   : > { %v1396_v28 = vadd.f32 %v2172_v27, %v1827_v26  ;;  %v1390_v29 = vpop.f32.mrb[33].mxu1 }
 0x3ef   : > { %v1391_v30 = vadd.f32 %v1827_v26, %v1390_v29 }
 0x3f0   : > { %v1433_v31 = vsel %vm1429_vm2, %v1396_v28, -inf }
 0x3f1   : > { %1434 = vmax.xlane.f32.xlu0 %v1433_v31  ;;  %v1430_v32 = vsel %vm1429_vm2, %v1391_v30, -inf }
 0x3f5   : > { %v2175_v34 = vpop.f32.mrb[34].mxu1  ;;  %1431 = vmax.xlane.f32.xlu0 %v1430_v32 }
 0x3f6   : > { %v1406_v35 = vadd.f32 %v2175_v34, %v1827_v26  ;;  %v1400_v36 = vpop.f32.mrb[35].mxu1 }
 0x3f7   : > { %v1401_v37 = vadd.f32 %v1827_v26, %v1400_v36 }
 0x3f8   : > { %v1439_v38 = vsel %vm1429_vm2, %v1406_v35, -inf }
 0x3f9   : > { %1440 = vmax.xlane.f32.xlu1 %v1439_v38  ;;  %v1436_v39 = vsel %vm1429_vm2, %v1401_v37, -inf }
 0x3fd   : > { %v2178_v40 = vpop.f32.mrb[36].mxu1  ;;  %1437 = vmax.xlane.f32.xlu1 %v1436_v39 }
 0x3fe   : > { %v1416_v41 = vadd.f32 %v2178_v40, %v1827_v26  ;;  %v1410_v42 = vpop.f32.mrb[37].mxu1 }
 0x3ff   : > { %v1411_v44 = vadd.f32 %v1827_v26, %v1410_v42 }
 0x400   : > { %v1445_v45 = vsel %vm1429_vm2, %v1416_v41, -inf }
 0x401   : > { %1446 = vmax.xlane.f32.xlu1 %v1445_v45  ;;  %v1442_v46 = vsel %vm1429_vm2, %v1411_v44, -inf }
 0x402   : > { %1443 = vmax.xlane.f32.xlu0 %v1442_v46 }
 0x405   : > { %v2181_v47 = vpop.f32.mrb[38].mxu1 }
 0x406   : > { %v1426_v48 = vadd.f32 %v2181_v47, %v1827_v26  ;;  %v1420_v49 = vpop.f32.mrb[39].mxu1 }
 0x407   : > { %v1421_v50 = vadd.f32 %v1827_v26, %v1420_v49 }
 0x408   : > { %v1451_v52 = vsel %vm1429_vm2, %v1426_v48, -inf }
 0x409   : > { %1452 = vmax.xlane.f32.xlu1 %v1451_v52  ;;  %v1448_v33 = vsel %vm1429_vm2, %v1421_v50, -inf }
 0x40a   : > { %1449 = vmax.xlane.f32.xlu0 %v1448_v33 }
 0x47e   : > { %v1435_v53 = vpop.xlane.xlu0 %1434 }
 0x47f   : > { %v3219_v54 = vsub.f32 %v1396_v28, %v1435_v53 }
 0x481   : > { %v1464_v55 = vmul.f32 1.442695, %v3219_v54 }
 0x482   : > { %v1432_v56 = vpop.xlane.xlu0 %1431 }
 0x483   : > { %2432 = vpow2.f32 %v1464_v55  ;;  %v3222_v57 = vsub.f32 %v1391_v30, %v1432_v56 }
 0x485   : > { %v1462_v43 = vmul.f32 1.442695, %v3222_v57 }
 0x486   : > { %v1441_v58 = vpop.xlane.xlu1 %1440 }
 0x487   : > { %2434 = vpow2.f32 %v1462_v43  ;;  %v3225_v60 = vsub.f32 %v1406_v35, %v1441_v58 }
 0x489   : > { %v1468_v61 = vmul.f32 1.442695, %v3225_v60 }
 0x48a   : > { %v1438_v62 = vpop.xlane.xlu1 %1437 }
 0x48b   : > { %2436 = vpow2.f32 %v1468_v61  ;;  %v3228_v51 = vsub.f32 %v1401_v37, %v1438_v62 }
 0x48d   : > { %v2433_v63 = vpop.eup %2432  ;;  %v1466_v0 = vmul.f32 1.442695, %v3228_v51 }
 0x48e   : > { %v1447_v1 = vpop.xlane.xlu1 %1446  ;;  %v1481_v2 = vsel %vm1429_vm2, %v2433_v63, 0.0 }
 0x48f   : > { %2438 = vpow2.f32 %v1466_v0  ;;  %v3232_v4 = vsub.f32 %v1416_v41, %v1447_v1  ;;  %1482 = vadd.xlane.f32.xlu1 %v1481_v2  ;;  %v1444_v5 = vpop.xlane.xlu0 %1443 }
 0x490   : > { %v3234_v6 = vsub.f32 %v1411_v44, %v1444_v5 }
 0x491   : > { %v2435_v7 = vpop.eup %2434  ;;  %v1472_v8 = vmul.f32 1.442695, %v3232_v4 }
 0x492   : > { %v1470_v59 = vmul.f32 1.442695, %v3234_v6  ;;  %v1478_v9 = vsel %vm1429_vm2, %v2435_v7, 0.0 }
 0x493   : > { %2440 = vpow2.f32 %v1472_v8  ;;  %1479 = vadd.xlane.f32.xlu0 %v1478_v9 }
 0x494   : > { %2442 = vpow2.f32 %v1470_v59 }
 0x495   : > { %v2437_v10 = vpop.eup %2436 }
 0x496   : > { %v1453_v12 = vpop.xlane.xlu1 %1452  ;;  %v1487_v13 = vsel %vm1429_vm2, %v2437_v10, 0.0 }
 0x497   : > { %v3240_v14 = vsub.f32 %v1426_v48, %v1453_v12  ;;  %1488 = vadd.xlane.f32.xlu1 %v1487_v13  ;;  %v1450_v3 = vpop.xlane.xlu0 %1449 }
 0x498   : > { %v3242_v15 = vsub.f32 %v1421_v50, %v1450_v3 }
 0x499   : > { %v2439_v16 = vpop.eup %2438  ;;  %v1476_v17 = vmul.f32 1.442695, %v3240_v14 }
 0x49a   : > { %v1474_v18 = vmul.f32 1.442695, %v3242_v15  ;;  %v1484_v20 = vsel %vm1429_vm2, %v2439_v16, 0.0 }
 0x49b   : > { %2444 = vpow2.f32 %v1476_v17  ;;  %1485 = vadd.xlane.f32.xlu0 %v1484_v20 }
 0x49c   : > { %2446 = vpow2.f32 %v1474_v18 }
 0x49d   : > { %v2441_v21 = vpop.eup %2440 }
 0x49e   : > { %v2443_v22 = vpop.eup %2442  ;;  %v1493_v11 = vsel %vm1429_vm2, %v2441_v21, 0.0 }
 0x49f   : > { %1494 = vadd.xlane.f32.xlu1 %v1493_v11  ;;  %v1490_v23 = vsel %vm1429_vm2, %v2443_v22, 0.0 }
 0x4a0   : > { %1491 = vadd.xlane.f32.xlu0 %v1490_v23 }
 0x4a5   : > { %v2445_v24 = vpop.eup %2444 }
 0x4a6   : > { %v2447_v19 = vpop.eup %2446  ;;  %v1499_v25 = vsel %vm1429_vm2, %v2445_v24, 0.0 }
 0x4a7   : > { %1500 = vadd.xlane.f32.xlu1 %v1499_v25  ;;  %v1496_v26 = vsel %vm1429_vm2, %v2447_v19, 0.0 }
 0x4a8   : > { %1497 = vadd.xlane.f32.xlu0 %v1496_v26 }
 0x51c   : > { %v1483_v27 = vpop.xlane.xlu1 %1482 }
 0x51d   : > { %2448 = vlog2.f32 %v1483_v27 }
 0x520   : > { %v1480_v28 = vpop.xlane.xlu0 %1479 }
 0x521   : > { %2450 = vlog2.f32 %v1480_v28 }
 0x524   : > { %v1489_v29 = vpop.xlane.xlu1 %1488 }
 0x525   : > { %2452 = vlog2.f32 %v1489_v29 }
 0x527   : > { %v2449_v30 = vpop.eup %2448 }
 0x528   : > { %v1505_v31 = vmul.f32 0.6931472, %v2449_v30  ;;  %v1486_v32 = vpop.xlane.xlu0 %1485 }
 0x529   : > { %2454 = vlog2.f32 %v1486_v32 }
 0x52a   : > { %v1519_v34 = vsub.f32 %v3219_v54, %v1505_v31 }
 0x52b   : > { %v2451_v35 = vpop.eup %2450 }
 0x52c   : > { %1527 = vst.msk [vmem:[%s3253_s12 + $0x8] sm:$0xff] %vm1429_vm2, %v1519_v34  ;;  %v1503_v36 = vmul.f32 0.6931472, %v2451_v35  ;;  %v1495_v37 = vpop.xlane.xlu1 %1494 }
 0x52d   : > { %2456 = vlog2.f32 %v1495_v37  ;;  %v1492_v38 = vpop.xlane.xlu0 %1491 }
 0x52e   : > { %v1518_v39 = vsub.f32 %v3222_v57, %v1503_v36  ;;  %2458 = vlog2.f32 %v1492_v38 }
 0x52f   : > { %v2453_v40 = vpop.eup %2452 }
 0x530   : > { %1526 = vst.msk [vmem:[%s3253_s12] sm:$0xff] %vm1429_vm2, %v1518_v39  ;;  %v1509_v41 = vmul.f32 0.6931472, %v2453_v40 }
 0x532   : > { %v1521_v42 = vsub.f32 %v3225_v60, %v1509_v41 }
 0x533   : > { %v2455_v44 = vpop.eup %2454 }
 0x534   : > { %1529 = vst.msk [vmem:[%s3253_s12 + $0x18] sm:$0xff] %vm1429_vm2, %v1521_v42  ;;  %v1507_v45 = vmul.f32 0.6931472, %v2455_v44  ;;  %v1501_v46 = vpop.xlane.xlu1 %1500 }
 0x535   : > { %2460 = vlog2.f32 %v1501_v46  ;;  %v1498_v47 = vpop.xlane.xlu0 %1497 }
 0x536   : > { %v1520_v48 = vsub.f32 %v3228_v51, %v1507_v45  ;;  %2462 = vlog2.f32 %v1498_v47 }
 0x537   : > { %v2457_v49 = vpop.eup %2456 }
 0x538   : > { %v2459_v50 = vpop.eup %2458  ;;  %1528 = vst.msk [vmem:[%s3253_s12 + $0x10] sm:$0xff] %vm1429_vm2, %v1520_v48  ;;  %v1513_v52 = vmul.f32 0.6931472, %v2457_v49 }
 0x539   : > { %v1511_v33 = vmul.f32 0.6931472, %v2459_v50 }
 0x53a   : > { %v1523_v53 = vsub.f32 %v3232_v4, %v1513_v52 }
 0x53b   : > { %v1522_v54 = vsub.f32 %v3234_v6, %v1511_v33 }
 0x53c   : > { %1531 = vst.msk [vmem:[%s3253_s12 + $0x28] sm:$0xff] %vm1429_vm2, %v1523_v53 }
 0x53d   : > { %1530 = vst.msk [vmem:[%s3253_s12 + $0x20] sm:$0xff] %vm1429_vm2, %v1522_v54 }
 0x53f   : > { %v2461_v55 = vpop.eup %2460  ;;  %1540 = sbr.rel (!%p2685_p8) target bundleno = 1399 (0x577), region = 64 }
 0x540   : > { %v2463_v56 = vpop.eup %2462  ;;  %v1517_v57 = vmul.f32 0.6931472, %v2461_v55 }
 0x541   : > { %v1515_v43 = vmul.f32 0.6931472, %v2463_v56 }
 0x542   : > { %v1525_v58 = vsub.f32 %v3240_v14, %v1517_v57 }
 0x543   : > { %v1524_v60 = vsub.f32 %v3242_v15, %v1515_v43 }
 0x544   : > { %1533 = vst.msk [vmem:[%s3253_s12 + $0x38] sm:$0xff] %vm1429_vm2, %v1525_v58 }
 0x545   : > { %1532 = vst.msk [vmem:[%s3253_s12 + $0x30] sm:$0xff] %vm1429_vm2, %v1524_v60 }
 0x546   : > { %s3364_s16 = smov (!%p1543_p7, %s1542_s16), 8 }
 0x547   : > { %s1838_s20 = sshll.u32 %s3364_s16, 7 }
 0x548   : > { %p1841_p11 = scmp.eq.s32.totalorder %s1838_s20, 0 }
 0x549   : > { %s3291_s19 = sshrl.u32 (!%p1841_p11), %s3364_s16, 3 }
 0x54a   : > { %1551 = sbr.rel (%p1841_p11) target bundleno = 1399 (0x577), region = 68  ;;  %p1842_p8 = scmp.le.s32.totalorder (!%p1841_p11), %s3291_s19, 0 }
 0x551   : > { %1741 = sbr.rel (%p1842_p8) target bundleno = 1378 (0x562), region = 150  ;;  %s3354_s13 = smov (!%p1842_p8), %s3285_s21 }
 0x552   : > { %s3355_s28 = smov (!%p1842_p8), %s3253_s12  ;;  %s3300_s18 = smov (!%p1842_p8), 0  }
 0x553   : > { %s3302_s22 = smov (!%p1842_p8), 0  }
 0x558 LB: >> { %v1627_v61 = vld [vmem:[%s2566_s28] sm:$0xff]  ;;  %v1629_v62 = vld [vmem:[%s2566_s28 + $0x8] sm:$0xff]  ;;  %v1631_v51 = vld [vmem:[%s2566_s28 + $0x10] sm:$0xff]  ;;  %s1643_s25 = sadd.s32 1, %s2570_s18  ;;  %s1621_s22 = sadd.s32 1, %s2574_s22   ;;  %s2574_s22 = sphi %s3302_s22, %s1621_s22   ;;  %s2570_s18 = sphi %s3300_s18, %s3356_s18   ;;  %s2566_s28 = sphi %s3355_s28, %s1648_s28   ;;  %s2562_s13 = sphi %s3354_s13, %s1649_s13  }
 0x559   : >> { %1628 = vst [vmem:[%s2562_s13] sm:$0xff] %v1627_v61  ;;  %1630 = vst [vmem:[%s2562_s13 + $0x8] sm:$0xff] %v1629_v62  ;;  %v1633_v63 = vld [vmem:[%s2566_s28 + $0x18] sm:$0xff]  ;;  %v1635_v0 = vld [vmem:[%s2566_s28 + $0x20] sm:$0xff]  ;;  %p1644_p6 = scmp.ge.s32.totalorder %s1643_s25, %s3291_s19  ;;  %p1620_p9 = scmp.ge.s32.totalorder %s1621_s22, %s3291_s19 }
 0x55a   : >> { %1632 = vst [vmem:[%s2562_s13 + $0x10] sm:$0xff] %v1631_v51  ;;  %v1637_v1 = vld [vmem:[%s2566_s28 + $0x28] sm:$0xff]  ;;  %1634 = vst [vmem:[%s2562_s13 + $0x18] sm:$0xff] %v1633_v63  ;;  %v1639_v2 = vld [vmem:[%s2566_s28 + $0x30] sm:$0xff] }
 0x55b   : >> { %1636 = vst [vmem:[%s2562_s13 + $0x20] sm:$0xff] %v1635_v0  ;;  %1638 = vst [vmem:[%s2562_s13 + $0x28] sm:$0xff] %v1637_v1  ;;  %v1641_v4 = vld [vmem:[%s2566_s28 + $0x38] sm:$0xff]  ;;  %s3366_s25 = smov (%p1644_p6, %s1643_s25), 0  ;;  %1623 = sbr.rel (!%p1620_p9) target bundleno = 1368 (0x558), region = 156 }
 0x55c   : >> { %1640 = vst [vmem:[%s2562_s13 + $0x30] sm:$0xff] %v1639_v2  ;;  %1642 = vst [vmem:[%s2562_s13 + $0x38] sm:$0xff] %v1641_v4  ;;  %s1843_s27 = sshll.u32 %s3366_s25, 6  ;;  %s3356_s18 = smov %s3366_s25 }
 0x55d   : >> { %s1648_s28 = scalar_lea.vmem %s3253_s12, %s1843_s27 [#allocation4]   ;;  %s1649_s13 = scalar_lea.vmem %s3285_s21, %s1843_s27  }
 0x562 PF: > { %s3321_s24 = sand.u32 7, %s3364_s16   ;;  %s1854_s26 = sshll.u32 %s3291_s19, 6 }
 0x563   : > { %s1654_s23 = scalar_lea.vmem %s3253_s12, %s1854_s26 [#allocation4]   ;;  %s1656_s29 = scalar_lea.vmem %s3285_s21, %s1854_s26  }
 0x564   : > { %p1848_p10 = scmp.le.s32.totalorder %s3321_s24, 0 }
 0x565   : > { %s2576_s30 = smov (!%p1848_p10), %s1656_s29   ;;  %s2580_s15 = smov (!%p1848_p10), %s1654_s23  }
 0x566   : > { %1755 = sbr.rel (%p1848_p10) target bundleno = 1399 (0x577), region = 161  ;;  %s2584_s20 = smov (!%p1848_p10), 0  }
 0x567   : > { %s2588_s25 = smov (!%p1848_p10), 0  }
 0x56d LB: >> { %v1666_v5 = vld [vmem:[%s2582_s15] sm:$0xff]  ;;  %s1668_s16 = sadd.s32 1, %s2586_s20  ;;  %s1660_s25 = sadd.s32 1, %s2590_s25   ;;  %s2590_s25 = sphi %s2588_s25, %s1660_s25   ;;  %s2586_s20 = sphi %s2584_s20, %s2585_s20   ;;  %s2582_s15 = sphi %s2580_s15, %s1673_s15   ;;  %s2578_s30 = sphi %s2576_s30, %s1674_s30  }
 0x56e   : >> { %1667 = vst [vmem:[%s2578_s30] sm:$0xff] %v1666_v5  ;;  %p1669_p12 = scmp.ge.s32.totalorder %s1668_s16, %s3321_s24  ;;  %p1659_p13 = scmp.ge.s32.totalorder %s1660_s25, %s3321_s24 }
 0x570   : >> { %s3368_s16 = smov (%p1669_p12, %s1668_s16), 0  ;;  %1662 = sbr.rel (!%p1659_p13) target bundleno = 1389 (0x56d), region = 167 }
 0x571   : >> { %s1849_s12 = sshll.u32 %s3368_s16, 3  ;;  %s2585_s20 = smov %s3368_s16  }
 0x572   : >> { %s1673_s15 = scalar_lea.vmem %s1654_s23, %s1849_s12 [#allocation4]   ;;  %s1674_s30 = scalar_lea.vmem %s1656_s29, %s1849_s12  }
 0x577 PF: > { %p19_p1 = scmp.ge.s32.totalorder %s2667_s14, 6   ;;  %s3357_s30 = smov %s2550_s10 }
 0x578   : > { %s3358_s10 = smov %s2554_s11  ;;  %s3359_s11 = smov %s2677_s17 }
 0x579   : > { %s3360_s12 = smov %s2667_s14  ;;  %21 = sbr.rel (!%p19_p1) target bundleno = 3 (0x3), region = 178 }
 0x580   :  { %1690 = vsyncpa [#allocation3], 1 }
 0x581   :  { %1692 = vsyncpa [#allocation3 + $0x1], 1 }

</bundles_post_ra>
